<compile_context>
chip_gen: v5e
topology: v5e:2x2
jax: 0.10.0
libtpu: 0.0.40
codegen_flags: <defaults>
</compile_context>

<pallas_src>
import math

import jax
import jax.numpy as jnp
import numpy as np
from jax.experimental import pallas as pl
from jax.experimental.pallas import tpu as pltpu

# ----------------------------- model hyper-params -----------------------------
EMBED_DIM = 32        # embedding_dim
REDUCED_DIM = 32      # reduced_dim
HIDDEN_DIM = 128      # QueryAnalyzer hidden_dim (torch default 128)
BASE_BUDGET = 16      # base_budget (kept small so the budget < context length)
ALPHA = 0.5
TEMPERATURE = 1.0


# --------------------------------- kernel -------------------------------------
def dsr_kernel(q_ref, c_ref, m_ref,
               wq_ref, bq_ref, wc_ref, bc_ref,
               w1_ref, b1_ref, w2t_ref, b2_ref,
               scores_ref, selmask_ref, comp_ref):
    BT, Q, E = q_ref.shape
    _, C, _ = c_ref.shape

    q = q_ref[...]            # (BT, Q, E)
    c = c_ref[...]            # (BT, C, E)
    m = m_ref[...]            # (BT, C)

    # Flatten batch into the matmul M axis so the MXU sees BT*Q / BT*C rows.
    q2 = q.reshape(BT * Q, E)
    c2 = c.reshape(BT * C, E)

    def l2norm(x):
        ss = jnp.sum(x * x, axis=-1, keepdims=True)
        # eps is squared (1e-24) so this matches F.normalize(p=2, eps=1e-12).
        return x * jax.lax.rsqrt(jnp.maximum(ss, 1e-24))

    # --- encoders (MXU) + L2 normalize ---
    qr = l2norm(jnp.dot(q2, wq_ref[...], preferred_element_type=jnp.float32)
                + bq_ref[...])                                            # (BT*Q, R)
    cr = l2norm(jnp.dot(c2, wc_ref[...], preferred_element_type=jnp.float32)
                + bc_ref[...])                                            # (BT*C, R)

    # --- block-diagonal mean-pooling matrix: both means run on the MXU ---
    row = jax.lax.broadcasted_iota(jnp.int32, (BT, BT * Q), 0)
    col = jax.lax.broadcasted_iota(jnp.int32, (BT, BT * Q), 1)
    in_blk = (col >= row * Q) & (col < (row + 1) * Q)
    pool = jnp.where(in_blk, jnp.float32(1.0 / Q), jnp.float32(0.0))      # (BT, BT*Q)

    qp = l2norm(jnp.dot(pool, qr, preferred_element_type=jnp.float32))    # (BT, R)
    pooled = jnp.dot(pool, q2, preferred_element_type=jnp.float32)        # (BT, E)

    # --- relevance scores (per-batch dot of pooled query vs context rows) ---
    cr3 = cr.reshape(BT, C, -1)                                           # (BT, C, R)
    scores = jnp.sum(cr3 * qp[:, None, :], axis=-1)                       # (BT, C)
    scores = jnp.where(m > 0.0, scores, jnp.float32(-jnp.inf))            # masked_fill(-inf)

    # --- QueryAnalyzer MLP: fc1 on MXU, fc2 as VPU multiply + lane reduce ---
    h = jnp.maximum(
        jnp.dot(pooled, w1_ref[...], preferred_element_type=jnp.float32) + b1_ref[...],
        0.0)                                                              # (BT, H)
    comp = jax.nn.sigmoid(
        jnp.sum(h * w2t_ref[...], axis=-1, keepdims=True) + b2_ref[...])  # (BT, 1)

    # --- adaptive token budget (also recomputed identically in the wrapper) ---
    budget_f = jnp.round(BASE_BUDGET * (1.0 + ALPHA * comp))              # (BT, 1)
    valid = jnp.sum(m, axis=-1, keepdims=True)                            # (BT, 1)
    budget_f = jnp.minimum(budget_f, valid)

    # --- rank-based top-k -> selection mask ---
    # rank[b, j] = #{k : scores[b, k] > scores[b, j]}; token selected iff rank < budget.
    # (equivalent to torch.topk for tie-free scores)
    greater = (scores[:, :, None] > scores[:, None, :]).astype(jnp.float32)  # (BT, C, C)
    ones_row = jnp.ones((BT, 1, C), jnp.float32)
    rank = jax.lax.dot_general(                                               # MXU reduce
        ones_row, greater,
        dimension_numbers=(((2,), (1,)), ((0,), (0,))),
        preferred_element_type=jnp.float32)                                   # (BT, 1, C)
    rank = rank.reshape(BT, C)
    sel = (rank < budget_f).astype(jnp.float32)                               # (BT, C)

    scores_ref[...] = scores
    selmask_ref[...] = sel
    comp_ref[...] = comp


# --------------------------------- wrapper ------------------------------------
@jax.jit
def dsr_forward(q, c, mask, Wq, bq, Wc, bc, W1, b1, W2t, b2):
    B, Q, E = q.shape
    _, C, _ = c.shape
    R = Wq.shape[1]
    H = W1.shape[1]

    BT = B if B <= 8 else 8           # batch elements per grid step
    if B % BT != 0:
        raise ValueError("B must be divisible by the batch tile")
    nb = B // BT

    mask_f = mask.astype(jnp.float32)

    rep2 = lambda i: (0, 0)
    batch2 = lambda i: (i, 0)
    batch3 = lambda i: (i, 0, 0)

    scores, selmask, comp = pl.pallas_call(
        dsr_kernel,
        out_shape=(
            jax.ShapeDtypeStruct((B, C), jnp.float32),   # relevance scores (masked)
            jax.ShapeDtypeStruct((B, C), jnp.float32),   # selection mask
            jax.ShapeDtypeStruct((B, 1), jnp.float32),   # query complexity
        ),
        grid_spec=pltpu.PrefetchScalarGridSpec(
            num_scalar_prefetch=0,
            grid=(nb,),
            in_specs=[
                pl.BlockSpec((BT, Q, E), batch3),        # query embeddings
                pl.BlockSpec((BT, C, E), batch3),        # context embeddings
                pl.BlockSpec((BT, C), batch2),           # context mask
                pl.BlockSpec((E, R), rep2),              # query_encoder W
                pl.BlockSpec((1, R), rep2),              # query_encoder b
                pl.BlockSpec((E, R), rep2),              # context_encoder W
                pl.BlockSpec((1, R), rep2),              # context_encoder b
                pl.BlockSpec((E, H), rep2),              # analyzer fc1 W
                pl.BlockSpec((1, H), rep2),              # analyzer fc1 b
                pl.BlockSpec((1, H), rep2),              # analyzer fc2 W (transposed)
                pl.BlockSpec((1, 1), rep2),              # analyzer fc2 b
            ],
            out_specs=[
                pl.BlockSpec((BT, C), batch2),
                pl.BlockSpec((BT, C), batch2),
                pl.BlockSpec((BT, 1), batch2),
            ],
        ),
        compiler_params=pltpu.CompilerParams(dimension_semantics=("parallel",)),
    )(q, c, mask_f, Wq, bq, Wc, bc, W1, b1, W2t, b2)

    comp = comp.reshape(B)
    # budget recomputed outside the kernel (same formula & inputs => identical),
    # removing a lane-width-1 output and its per-step write-back DMA.
    budget = jnp.minimum(
        jnp.round(BASE_BUDGET * (1.0 + ALPHA * comp)),
        jnp.sum(mask_f, axis=-1)).astype(jnp.int32)
    return scores, selmask, comp, budget


# ------------------------------ pure-JAX reference -----------------------------
def ref_forward(q, c, mask, Wq, bq, Wc, bc, W1, b1, W2, b2):
    def l2norm(x):
        n = jnp.sqrt(jnp.sum(x * x, axis=-1, keepdims=True))
        return x / jnp.maximum(n, 1e-12)

    qr = l2norm(q @ Wq + bq[0])
    cr = l2norm(c @ Wc + bc[0])
    qp = l2norm(jnp.mean(qr, axis=1))
    scores = jnp.einsum("br,bcr->bc", qp, cr)
    scores = jnp.where(mask > 0, scores, -jnp.inf)

    pooled = jnp.mean(q, axis=1)
    h = jnp.maximum(pooled @ W1 + b1[0], 0.0)
    comp = jax.nn.sigmoid(h @ W2 + b2[0])[:, 0]

    budget = jnp.minimum(jnp.round(BASE_BUDGET * (1.0 + ALPHA * comp)),
                         jnp.sum(mask, axis=-1)).astype(jnp.int32)
    rank = jnp.sum((scores[:, :, None] > scores[:, None, :]).astype(jnp.float32), axis=1)
    sel = (rank < budget[:, None].astype(jnp.float32)).astype(jnp.float32)
    return scores, sel, comp, budget


# ---------------------------------- main ---------------------------------------
def init_linear(key, fan_in, fan_out):
    k1, k2 = jax.random.split(key)
    bound = 1.0 / math.sqrt(fan_in)
    W = jax.random.uniform(k1, (fan_in, fan_out), jnp.float32, -bound, bound)
    b = jax.random.uniform(k2, (1, fan_out), jnp.float32, -bound, bound)
    return W, b


if __name__ == "__main__":
    B, Q, C = 2, 8, 128
    key = jax.random.PRNGKey(0)
    kq, kc, k1, k2, k3, k4 = jax.random.split(key, 6)

    q = jax.random.normal(kq, (B, Q, EMBED_DIM), jnp.float32)
    c = jax.random.normal(kc, (B, C, EMBED_DIM), jnp.float32)
    lengths = jnp.array([C, 96], jnp.int32)
    mask = (jnp.arange(C)[None, :] < lengths[:, None]).astype(jnp.float32)  # (B, C)

    Wq, bq = init_linear(k1, EMBED_DIM, REDUCED_DIM)      # query_encoder
    Wc, bc = init_linear(k2, EMBED_DIM, REDUCED_DIM)      # context_encoder
    W1, b1 = init_linear(k3, EMBED_DIM, HIDDEN_DIM)       # analyzer fc1
    W2, b2 = init_linear(k4, HIDDEN_DIM, 1)               # analyzer fc2
    W2t = W2.T                                            # (1, H) lane-dense for the kernel

    scores, selmask, comp, budget = dsr_forward(q, c, mask, Wq, bq, Wc, bc,
                                                W1, b1, W2t, b2)
    jax.block_until_ready((scores, selmask, comp, budget))

    # host-side ragged selected_tokens, mirroring the PyTorch per-batch loop.
    # TODO(synk): training-mode Gumbel-noise sampling branch not implemented (eval path only).
    scores_np = np.asarray(scores)
    budget_np = np.asarray(budget)
    selected_tokens = [np.argsort(-scores_np[i])[: int(budget_np[i])] for i in range(B)]
    result = {"selected_tokens": selected_tokens,
              "selection_mask": selmask,
              "relevance_scores": scores}

    # correctness check against pure-JAX reference
    r_scores, r_sel, r_comp, r_budget = ref_forward(q, c, mask, Wq, bq, Wc, bc,
                                                    W1, b1, W2, b2)
    np.testing.assert_allclose(np.asarray(scores), np.asarray(r_scores), rtol=1e-5, atol=1e-5)
    np.testing.assert_array_equal(np.asarray(selmask), np.asarray(r_sel))
    np.testing.assert_allclose(np.asarray(comp), np.asarray(r_comp), rtol=1e-5, atol=1e-5)
    np.testing.assert_array_equal(np.asarray(budget), np.asarray(r_budget))

    print("KERNEL_OK")
</pallas_src>

<mosaic_0001>
module attributes {stable_mosaic.version = 11 : i64} {
  func.func @dsr_kernel(%arg0: i32, %arg1: memref<2x8x32xf32, #tpu.memory_space<vmem>>, %arg2: memref<2x128x32xf32, #tpu.memory_space<vmem>>, %arg3: memref<2x128xf32, #tpu.memory_space<vmem>>, %arg4: memref<32x32xf32, #tpu.memory_space<vmem>>, %arg5: memref<1x32xf32, #tpu.memory_space<vmem>>, %arg6: memref<32x32xf32, #tpu.memory_space<vmem>>, %arg7: memref<1x32xf32, #tpu.memory_space<vmem>>, %arg8: memref<32x128xf32, #tpu.memory_space<vmem>>, %arg9: memref<1x128xf32, #tpu.memory_space<vmem>>, %arg10: memref<1x128xf32, #tpu.memory_space<vmem>>, %arg11: memref<1x1xf32, #tpu.memory_space<vmem>>, %arg12: memref<2x128xf32, #tpu.memory_space<vmem>>, %arg13: memref<2x128xf32, #tpu.memory_space<vmem>>, %arg14: memref<2x1xf32, #tpu.memory_space<vmem>>) attributes {dimension_semantics = [#tpu.dimension_semantics<parallel>], iteration_bounds = array<i64: 1>, scalar_prefetch = 0 : i64, scratch_operands = 0 : i64, tpu.core_type = #tpu.core_type<tc>, window_params = [{transform_indices = @transform_0, window_bounds = array<i64: 2, 8, 32>}, {transform_indices = @transform_1, window_bounds = array<i64: 2, 128, 32>}, {transform_indices = @transform_2, window_bounds = array<i64: 2, 128>}, {pipeline_mode = #tpu.pipeline_mode<synchronous>, transform_indices = @transform_3, window_bounds = array<i64: 32, 32>}, {pipeline_mode = #tpu.pipeline_mode<synchronous>, transform_indices = @transform_4, window_bounds = array<i64: 1, 32>}, {pipeline_mode = #tpu.pipeline_mode<synchronous>, transform_indices = @transform_5, window_bounds = array<i64: 32, 32>}, {pipeline_mode = #tpu.pipeline_mode<synchronous>, transform_indices = @transform_6, window_bounds = array<i64: 1, 32>}, {pipeline_mode = #tpu.pipeline_mode<synchronous>, transform_indices = @transform_7, window_bounds = array<i64: 32, 128>}, {pipeline_mode = #tpu.pipeline_mode<synchronous>, transform_indices = @transform_8, window_bounds = array<i64: 1, 128>}, {pipeline_mode = #tpu.pipeline_mode<synchronous>, transform_indices = @transform_9, window_bounds = array<i64: 1, 128>}, {pipeline_mode = #tpu.pipeline_mode<synchronous>, transform_indices = @transform_10, window_bounds = array<i64: 1, 1>}, {transform_indices = @transform_11, window_bounds = array<i64: 2, 128>}, {transform_indices = @transform_12, window_bounds = array<i64: 2, 128>}, {transform_indices = @transform_13, window_bounds = array<i64: 2, 1>}]} {
    %c0 = arith.constant 0 : index
    %c0_0 = arith.constant 0 : index
    %c0_1 = arith.constant 0 : index
    %0 = vector.load %arg1[%c0, %c0_0, %c0_1] : memref<2x8x32xf32, #tpu.memory_space<vmem>>, vector<2x8x32xf32>
    %c0_2 = arith.constant 0 : index
    %c0_3 = arith.constant 0 : index
    %c0_4 = arith.constant 0 : index
    %1 = vector.load %arg2[%c0_2, %c0_3, %c0_4] : memref<2x128x32xf32, #tpu.memory_space<vmem>>, vector<2x128x32xf32>
    %c0_5 = arith.constant 0 : index
    %c0_6 = arith.constant 0 : index
    %2 = vector.load %arg3[%c0_5, %c0_6] : memref<2x128xf32, #tpu.memory_space<vmem>>, vector<2x128xf32>
    %3 = vector.shape_cast %0 : vector<2x8x32xf32> to vector<16x32xf32>
    %4 = vector.shape_cast %1 : vector<2x128x32xf32> to vector<256x32xf32>
    %c0_7 = arith.constant 0 : index
    %c0_8 = arith.constant 0 : index
    %5 = vector.load %arg4[%c0_7, %c0_8] : memref<32x32xf32, #tpu.memory_space<vmem>>, vector<32x32xf32>
    %cst = arith.constant dense<0.000000e+00> : vector<16x32xf32>
    %6 = tpu.matmul %3, %5, %cst {dimension_numbers = #tpu.dot_dimension_numbers<[1], [0], [0], [1], [0, 0, 1, 1], [], []>} : vector<16x32xf32>, vector<32x32xf32>, vector<16x32xf32> -> vector<16x32xf32>
    %c0_9 = arith.constant 0 : index
    %c0_10 = arith.constant 0 : index
    %7 = vector.load %arg5[%c0_9, %c0_10] : memref<1x32xf32, #tpu.memory_space<vmem>>, vector<1x32xf32>
    %8 = vector.broadcast %7 : vector<1x32xf32> to vector<16x32xf32>
    %9 = arith.addf %6, %8 : vector<16x32xf32>
    %10 = arith.mulf %9, %9 : vector<16x32xf32>
    %cst_11 = arith.constant dense<0.000000e+00> : vector<16xf32>
    %11 = vector.multi_reduction <add>, %10, %cst_11 [1] : vector<16x32xf32> to vector<16xf32>
    %12 = vector.shape_cast %11 : vector<16xf32> to vector<16x1xf32>
    %cst_12 = arith.constant 1.000000e-24 : f32
    %13 = vector.broadcast %cst_12 : f32 to vector<16x1xf32>
    %14 = arith.maximumf %12, %13 : vector<16x1xf32>
    %15 = math.rsqrt %14 : vector<16x1xf32>
    %16 = vector.broadcast %15 : vector<16x1xf32> to vector<16x32xf32>
    %17 = arith.mulf %9, %16 : vector<16x32xf32>
    %c0_13 = arith.constant 0 : index
    %c0_14 = arith.constant 0 : index
    %18 = vector.load %arg6[%c0_13, %c0_14] : memref<32x32xf32, #tpu.memory_space<vmem>>, vector<32x32xf32>
    %cst_15 = arith.constant dense<0.000000e+00> : vector<256x32xf32>
    %19 = tpu.matmul %4, %18, %cst_15 {dimension_numbers = #tpu.dot_dimension_numbers<[1], [0], [0], [1], [0, 0, 1, 1], [], []>} : vector<256x32xf32>, vector<32x32xf32>, vector<256x32xf32> -> vector<256x32xf32>
    %c0_16 = arith.constant 0 : index
    %c0_17 = arith.constant 0 : index
    %20 = vector.load %arg7[%c0_16, %c0_17] : memref<1x32xf32, #tpu.memory_space<vmem>>, vector<1x32xf32>
    %21 = vector.broadcast %20 : vector<1x32xf32> to vector<256x32xf32>
    %22 = arith.addf %19, %21 : vector<256x32xf32>
    %23 = arith.mulf %22, %22 : vector<256x32xf32>
    %cst_18 = arith.constant dense<0.000000e+00> : vector<256xf32>
    %24 = vector.multi_reduction <add>, %23, %cst_18 [1] : vector<256x32xf32> to vector<256xf32>
    %25 = vector.shape_cast %24 : vector<256xf32> to vector<256x1xf32>
    %cst_19 = arith.constant 1.000000e-24 : f32
    %26 = vector.broadcast %cst_19 : f32 to vector<256x1xf32>
    %27 = arith.maximumf %25, %26 : vector<256x1xf32>
    %28 = math.rsqrt %27 : vector<256x1xf32>
    %29 = vector.broadcast %28 : vector<256x1xf32> to vector<256x32xf32>
    %30 = arith.mulf %22, %29 : vector<256x32xf32>
    %31 = tpu.iota {dimensions = array<i32: 0>} : vector<2x16xi32>
    %32 = tpu.iota {dimensions = array<i32: 1>} : vector<2x16xi32>
    %c8_i32 = arith.constant 8 : i32
    %33 = vector.broadcast %c8_i32 : i32 to vector<2x16xi32>
    %34 = arith.muli %31, %33 : vector<2x16xi32>
    %35 = arith.cmpi sge, %32, %34 : vector<2x16xi32>
    %c1_i32 = arith.constant 1 : i32
    %36 = vector.broadcast %c1_i32 : i32 to vector<2x16xi32>
    %37 = arith.addi %31, %36 : vector<2x16xi32>
    %c8_i32_20 = arith.constant 8 : i32
    %38 = vector.broadcast %c8_i32_20 : i32 to vector<2x16xi32>
    %39 = arith.muli %37, %38 : vector<2x16xi32>
    %40 = arith.cmpi slt, %32, %39 : vector<2x16xi32>
    %41 = arith.andi %35, %40 : vector<2x16xi1>
    %cst_21 = arith.constant 1.250000e-01 : f32
    %cst_22 = arith.constant 0.000000e+00 : f32
    %42 = vector.broadcast %cst_21 : f32 to vector<2x16xf32>
    %43 = vector.broadcast %cst_22 : f32 to vector<2x16xf32>
    %44 = arith.select %41, %42, %43 : vector<2x16xi1>, vector<2x16xf32>
    %cst_23 = arith.constant dense<0.000000e+00> : vector<2x32xf32>
    %45 = tpu.matmul %44, %17, %cst_23 {dimension_numbers = #tpu.dot_dimension_numbers<[1], [0], [0], [1], [0, 0, 1, 1], [], []>} : vector<2x16xf32>, vector<16x32xf32>, vector<2x32xf32> -> vector<2x32xf32>
    %46 = arith.mulf %45, %45 : vector<2x32xf32>
    %cst_24 = arith.constant dense<0.000000e+00> : vector<2xf32>
    %47 = vector.multi_reduction <add>, %46, %cst_24 [1] : vector<2x32xf32> to vector<2xf32>
    %48 = vector.shape_cast %47 : vector<2xf32> to vector<2x1xf32>
    %cst_25 = arith.constant 1.000000e-24 : f32
    %49 = vector.broadcast %cst_25 : f32 to vector<2x1xf32>
    %50 = arith.maximumf %48, %49 : vector<2x1xf32>
    %51 = math.rsqrt %50 : vector<2x1xf32>
    %52 = vector.broadcast %51 : vector<2x1xf32> to vector<2x32xf32>
    %53 = arith.mulf %45, %52 : vector<2x32xf32>
    %cst_26 = arith.constant dense<0.000000e+00> : vector<2x32xf32>
    %54 = tpu.matmul %44, %3, %cst_26 {dimension_numbers = #tpu.dot_dimension_numbers<[1], [0], [0], [1], [0, 0, 1, 1], [], []>} : vector<2x16xf32>, vector<16x32xf32>, vector<2x32xf32> -> vector<2x32xf32>
    %55 = vector.shape_cast %30 : vector<256x32xf32> to vector<2x128x32xf32>
    %56 = vector.shape_cast %53 : vector<2x32xf32> to vector<2x1x32xf32>
    %57 = vector.broadcast %56 : vector<2x1x32xf32> to vector<2x128x32xf32>
    %58 = arith.mulf %55, %57 : vector<2x128x32xf32>
    %cst_27 = arith.constant dense<0.000000e+00> : vector<2x128xf32>
    %59 = vector.multi_reduction <add>, %58, %cst_27 [2] : vector<2x128x32xf32> to vector<2x128xf32>
    %cst_28 = arith.constant 0.000000e+00 : f32
    %60 = vector.broadcast %cst_28 : f32 to vector<2x128xf32>
    %61 = arith.cmpf ogt, %2, %60 : vector<2x128xf32>
    %cst_29 = arith.constant 0xFF800000 : f32
    %62 = vector.broadcast %cst_29 : f32 to vector<2x128xf32>
    %63 = arith.select %61, %59, %62 : vector<2x128xi1>, vector<2x128xf32>
    %c0_30 = arith.constant 0 : index
    %c0_31 = arith.constant 0 : index
    %64 = vector.load %arg8[%c0_30, %c0_31] : memref<32x128xf32, #tpu.memory_space<vmem>>, vector<32x128xf32>
    %cst_32 = arith.constant dense<0.000000e+00> : vector<2x128xf32>
    %65 = tpu.matmul %54, %64, %cst_32 {dimension_numbers = #tpu.dot_dimension_numbers<[1], [0], [0], [1], [0, 0, 1, 1], [], []>} : vector<2x32xf32>, vector<32x128xf32>, vector<2x128xf32> -> vector<2x128xf32>
    %c0_33 = arith.constant 0 : index
    %c0_34 = arith.constant 0 : index
    %66 = vector.load %arg9[%c0_33, %c0_34] : memref<1x128xf32, #tpu.memory_space<vmem>>, vector<1x128xf32>
    %67 = vector.broadcast %66 : vector<1x128xf32> to vector<2x128xf32>
    %68 = arith.addf %65, %67 : vector<2x128xf32>
    %cst_35 = arith.constant 0.000000e+00 : f32
    %69 = vector.broadcast %cst_35 : f32 to vector<2x128xf32>
    %70 = arith.maximumf %68, %69 : vector<2x128xf32>
    %c0_36 = arith.constant 0 : index
    %c0_37 = arith.constant 0 : index
    %71 = vector.load %arg10[%c0_36, %c0_37] : memref<1x128xf32, #tpu.memory_space<vmem>>, vector<1x128xf32>
    %72 = vector.broadcast %71 : vector<1x128xf32> to vector<2x128xf32>
    %73 = arith.mulf %70, %72 : vector<2x128xf32>
    %cst_38 = arith.constant dense<0.000000e+00> : vector<2xf32>
    %74 = vector.multi_reduction <add>, %73, %cst_38 [1] : vector<2x128xf32> to vector<2xf32>
    %75 = vector.shape_cast %74 : vector<2xf32> to vector<2x1xf32>
    %c0_39 = arith.constant 0 : index
    %c0_40 = arith.constant 0 : index
    %76 = vector.load %arg11[%c0_39, %c0_40] : memref<1x1xf32, #tpu.memory_space<vmem>>, vector<1x1xf32>
    %77 = vector.broadcast %76 : vector<1x1xf32> to vector<2x1xf32>
    %78 = arith.addf %75, %77 : vector<2x1xf32>
    %79 = arith.negf %78 : vector<2x1xf32>
    %80 = math.exp %79 : vector<2x1xf32>
    %cst_41 = arith.constant 1.000000e+00 : f32
    %81 = vector.broadcast %cst_41 : f32 to vector<2x1xf32>
    %82 = arith.addf %81, %80 : vector<2x1xf32>
    %83 = arith.divf %81, %82 : vector<2x1xf32>
    %cst_42 = arith.constant 5.000000e-01 : f32
    %84 = vector.broadcast %cst_42 : f32 to vector<2x1xf32>
    %85 = arith.mulf %84, %83 : vector<2x1xf32>
    %cst_43 = arith.constant 1.000000e+00 : f32
    %86 = vector.broadcast %cst_43 : f32 to vector<2x1xf32>
    %87 = arith.addf %86, %85 : vector<2x1xf32>
    %cst_44 = arith.constant 1.600000e+01 : f32
    %88 = vector.broadcast %cst_44 : f32 to vector<2x1xf32>
    %89 = arith.mulf %88, %87 : vector<2x1xf32>
    %90 = math.roundeven %89 : vector<2x1xf32>
    %cst_45 = arith.constant dense<0.000000e+00> : vector<2xf32>
    %91 = vector.multi_reduction <add>, %2, %cst_45 [1] : vector<2x128xf32> to vector<2xf32>
    %92 = vector.shape_cast %91 : vector<2xf32> to vector<2x1xf32>
    %93 = arith.minimumf %90, %92 : vector<2x1xf32>
    %94 = vector.shape_cast %63 : vector<2x128xf32> to vector<2x128x1xf32>
    %95 = vector.shape_cast %63 : vector<2x128xf32> to vector<2x1x128xf32>
    %96 = vector.broadcast %94 : vector<2x128x1xf32> to vector<2x128x128xf32>
    %97 = vector.broadcast %95 : vector<2x1x128xf32> to vector<2x128x128xf32>
    %98 = arith.cmpf ogt, %96, %97 : vector<2x128x128xf32>
    %99 = arith.extui %98 : vector<2x128x128xi1> to vector<2x128x128xi32>
    %100 = arith.sitofp %99 : vector<2x128x128xi32> to vector<2x128x128xf32>
    %cst_46 = arith.constant 1.000000e+00 : f32
    %101 = vector.broadcast %cst_46 : f32 to vector<2x1x128xf32>
    %cst_47 = arith.constant dense<0.000000e+00> : vector<2x1x128xf32>
    %102 = tpu.matmul %101, %100, %cst_47 {dimension_numbers = #tpu.dot_dimension_numbers<[2], [1], [1], [2], [0, 0, 0, 1, 1, 2], [0], [0]>} : vector<2x1x128xf32>, vector<2x128x128xf32>, vector<2x1x128xf32> -> vector<2x1x128xf32>
    %103 = vector.shape_cast %102 : vector<2x1x128xf32> to vector<2x128xf32>
    %104 = vector.broadcast %93 : vector<2x1xf32> to vector<2x128xf32>
    %105 = arith.cmpf olt, %103, %104 : vector<2x128xf32>
    %106 = arith.extui %105 : vector<2x128xi1> to vector<2x128xi32>
    %107 = arith.sitofp %106 : vector<2x128xi32> to vector<2x128xf32>
    %c0_48 = arith.constant 0 : index
    %c0_49 = arith.constant 0 : index
    %108 = vector.load %arg12[%c0_48, %c0_49] : memref<2x128xf32, #tpu.memory_space<vmem>>, vector<2x128xf32>
    tpu.vector_store %arg12[%c0_48, %c0_49], %63 {strides = array<i32>} : memref<2x128xf32, #tpu.memory_space<vmem>>, vector<2x128xf32>,
    %c0_50 = arith.constant 0 : index
    %c0_51 = arith.constant 0 : index
    %109 = vector.load %arg13[%c0_50, %c0_51] : memref<2x128xf32, #tpu.memory_space<vmem>>, vector<2x128xf32>
    tpu.vector_store %arg13[%c0_50, %c0_51], %107 {strides = array<i32>} : memref<2x128xf32, #tpu.memory_space<vmem>>, vector<2x128xf32>,
    %c0_52 = arith.constant 0 : index
    %c0_53 = arith.constant 0 : index
    %110 = vector.load %arg14[%c0_52, %c0_53] : memref<2x1xf32, #tpu.memory_space<vmem>>, vector<2x1xf32>
    tpu.vector_store %arg14[%c0_52, %c0_53], %83 {strides = array<i32>} : memref<2x1xf32, #tpu.memory_space<vmem>>, vector<2x1xf32>,
    return
  }
  func.func @transform_0(%arg0: i32) -> (i32, i32, i32) {
    %c0_i32 = arith.constant 0 : i32
    %c0_i32_0 = arith.constant 0 : i32
    %c0_i32_1 = arith.constant 0 : i32
    return %arg0, %c0_i32, %c0_i32_0 : i32, i32, i32
  }
  func.func @transform_1(%arg0: i32) -> (i32, i32, i32) {
    %c0_i32 = arith.constant 0 : i32
    %c0_i32_0 = arith.constant 0 : i32
    %c0_i32_1 = arith.constant 0 : i32
    return %arg0, %c0_i32, %c0_i32_0 : i32, i32, i32
  }
  func.func @transform_2(%arg0: i32) -> (i32, i32) {
    %c0_i32 = arith.constant 0 : i32
    %c0_i32_0 = arith.constant 0 : i32
    return %arg0, %c0_i32 : i32, i32
  }
  func.func @transform_3(%arg0: i32) -> (i32, i32) {
    %c0_i32 = arith.constant 0 : i32
    %c0_i32_0 = arith.constant 0 : i32
    %c0_i32_1 = arith.constant 0 : i32
    return %c0_i32, %c0_i32_0 : i32, i32
  }
  func.func @transform_4(%arg0: i32) -> (i32, i32) {
    %c0_i32 = arith.constant 0 : i32
    %c0_i32_0 = arith.constant 0 : i32
    %c0_i32_1 = arith.constant 0 : i32
    return %c0_i32, %c0_i32_0 : i32, i32
  }
  func.func @transform_5(%arg0: i32) -> (i32, i32) {
    %c0_i32 = arith.constant 0 : i32
    %c0_i32_0 = arith.constant 0 : i32
    %c0_i32_1 = arith.constant 0 : i32
    return %c0_i32, %c0_i32_0 : i32, i32
  }
  func.func @transform_6(%arg0: i32) -> (i32, i32) {
    %c0_i32 = arith.constant 0 : i32
    %c0_i32_0 = arith.constant 0 : i32
    %c0_i32_1 = arith.constant 0 : i32
    return %c0_i32, %c0_i32_0 : i32, i32
  }
  func.func @transform_7(%arg0: i32) -> (i32, i32) {
    %c0_i32 = arith.constant 0 : i32
    %c0_i32_0 = arith.constant 0 : i32
    %c0_i32_1 = arith.constant 0 : i32
    return %c0_i32, %c0_i32_0 : i32, i32
  }
  func.func @transform_8(%arg0: i32) -> (i32, i32) {
    %c0_i32 = arith.constant 0 : i32
    %c0_i32_0 = arith.constant 0 : i32
    %c0_i32_1 = arith.constant 0 : i32
    return %c0_i32, %c0_i32_0 : i32, i32
  }
  func.func @transform_9(%arg0: i32) -> (i32, i32) {
    %c0_i32 = arith.constant 0 : i32
    %c0_i32_0 = arith.constant 0 : i32
    %c0_i32_1 = arith.constant 0 : i32
    return %c0_i32, %c0_i32_0 : i32, i32
  }
  func.func @transform_10(%arg0: i32) -> (i32, i32) {
    %c0_i32 = arith.constant 0 : i32
    %c0_i32_0 = arith.constant 0 : i32
    %c0_i32_1 = arith.constant 0 : i32
    return %c0_i32, %c0_i32_0 : i32, i32
  }
  func.func @transform_11(%arg0: i32) -> (i32, i32) {
    %c0_i32 = arith.constant 0 : i32
    %c0_i32_0 = arith.constant 0 : i32
    return %arg0, %c0_i32 : i32, i32
  }
  func.func @transform_12(%arg0: i32) -> (i32, i32) {
    %c0_i32 = arith.constant 0 : i32
    %c0_i32_0 = arith.constant 0 : i32
    return %arg0, %c0_i32 : i32, i32
  }
  func.func @transform_13(%arg0: i32) -> (i32, i32) {
    %c0_i32 = arith.constant 0 : i32
    %c0_i32_0 = arith.constant 0 : i32
    return %arg0, %c0_i32 : i32, i32
  }
}

</mosaic_0001>

<bundles_post_ra>
// kernel: dsr_forward.1
= control target key start
LH: loop header
LB: loop body
LE: loop exit
PB: predicated region body
PF: predicated region fallthrough
CT: control target
= control target key end

     0   :  { %s3577_s0 = inlined_call_operand.vmem [shape: f32[2,8,32], index: 0, kind: input, shape index: {}]   ;;  %s3578_s1 = inlined_call_operand.vmem [shape: f32[2,128,32], index: 1, kind: input, shape index: {}]   ;;  %s3579_s2 = inlined_call_operand.vmem [shape: f32[2,128], index: 2, kind: input, shape index: {}]   ;;  %s3580_s3 = inlined_call_operand.vmem [shape: f32[32,32], index: 3, kind: input, shape index: {}]   ;;  %s3581_s4 = inlined_call_operand.vmem [shape: f32[1,32], index: 4, kind: input, shape index: {}]   ;;  %s3582_s5 = inlined_call_operand.vmem [shape: f32[32,32], index: 5, kind: input, shape index: {}]   ;;  %s3583_s6 = inlined_call_operand.vmem [shape: f32[1,32], index: 6, kind: input, shape index: {}]   ;;  %s3584_s7 = inlined_call_operand.vmem [shape: f32[32,128], index: 7, kind: input, shape index: {}]   ;;  %s3585_s8 = inlined_call_operand.vmem [shape: f32[1,128], index: 8, kind: input, shape index: {}]   ;;  %s3586_s9 = inlined_call_operand.vmem [shape: f32[1,128], index: 9, kind: input, shape index: {}]   ;;  %s3587_s10 = inlined_call_operand.<no memory space> [shape: f32[1,1], index: 10, kind: input, shape index: {}]   ;;  %s3588_s11 = inlined_call_operand.hbm [shape: f32[2,128], index: 11, kind: output, shape index: {0}]   ;;  %s3589_s12 = inlined_call_operand.hbm [shape: f32[2,128], index: 12, kind: output, shape index: {1}]   ;;  %s3590_s13 = inlined_call_operand.vmem [shape: f32[2,1], index: 13, kind: output, shape index: {2}]  }
   0x1   :  { %v19_v0 = vstv %s3587_s10 }
   0x2   :  { %20 = vst [vmem:[#allocation2] sm:$0x1] %v19_v0 }
   0x3   :  { %21 = vsyncpa [#allocation4], 0  ;;  %v83_v1 = vld [vmem:[%s3580_s3 + $0x18] sm:$0xff]  ;;  %v82_v2 = vld [vmem:[%s3580_s3 + $0x10] sm:$0xff]  ;;  %vm88_vm0 = vcmask 261120  }
   0x4   :  { %107 = vmatpush.msra.mxu0 %v83_v1  ;;  %v81_v3 = vld [vmem:[%s3580_s3 + $0x8] sm:$0xff]  ;;  %v153_v4 = vld [vmem:[%s3582_s5 + $0x18] sm:$0xff]  ;;  %v152_v5 = vld [vmem:[%s3582_s5 + $0x10] sm:$0xff] }
   0x5   :  { %1785 = vmatpush.msra.mxu1 %v153_v4  ;;  %v80_v6 = vld [vmem:[%s3580_s3] sm:$0xff]  ;;  %1786 = vmatpush.msra.mxu2 %v153_v4  ;;  %v151_v7 = vld [vmem:[%s3582_s5 + $0x8] sm:$0xff]  ;;  %v53_v10 = vld [vmem:[%s3578_s1 + $0x30] sm:$0xff] }
   0x6   :  { %108 = vmatpush.msra.mxu0 %v82_v2  ;;  %1787 = vmatpush.msra.mxu3 %v153_v4  ;;  %v45_v8 = vld [vmem:[%s3577_s0] sm:$0xff] }
   0x7   :  { %1788 = vmatpush.msra.mxu1 %v152_v5  ;;  %v150_v9 = vld [vmem:[%s3582_s5] sm:$0xff]  ;;  %1789 = vmatpush.msra.mxu2 %v152_v5 }
   0x8   :  { %109 = vmatpush.msra.mxu0 %v81_v3  ;;  %1790 = vmatpush.msra.mxu3 %v152_v5 }
   0x9   :  { %1791 = vmatpush.msra.mxu1 %v151_v7 }
   0xa   :  { %110 = vmatpush.msra.mxu0 %v80_v6 }
   0xb   :  { %22 = vsyncpa [#allocation6], 0  ;;  %1681 = vmatmul.msk.f32.vlgmr.msra.gmra.mxu0 %vm88_vm0, %v45_v8  ;;  %1792 = vmatpush.msra.mxu2 %v151_v7  ;;  %v64_v11 = vld [vmem:[%s3578_s1 + $0x88] sm:$0xff]  ;;  %v73_v12 = vld [vmem:[%s3578_s1 + $0xd0] sm:$0xff]  ;;  %v879_v42 = vlaneseq  ;;  %vm890_vm3 = vcmask 130048   ;;  %v3591_v51 = vmov 0.0  }
   0xc   :  { %1793 = vmatpush.msra.mxu3 %v151_v7  ;;  %1794 = vmatpush.msra.mxu1 %v150_v9  ;;  %v46_v13 = vld [vmem:[%s3577_s0 + $0x8] sm:$0xff]  ;;  %v54_v14 = vld [vmem:[%s3578_s1 + $0x38] sm:$0xff]  ;;  %v47_v16 = vld [vmem:[%s3578_s1] sm:$0xff]  ;;  %vm1251_vm5 = vcmask 1041408   ;;  %vm915_vm12 = vcmask 254976   ;;  %s1652_s25 = sshll.u32 %s3588_s11, 4  ;;  %s1653_s25 = int_to_ptr.hbm [resolvable:$true] %s1652_s25 }
   0xd   :  { %1689 = vmatmul.msk.f32.vlgmr.msra.gmra.mxu1 %vm88_vm0, %v53_v10  ;;  %1795 = vmatpush.msra.mxu2 %v150_v9  ;;  %v74_v15 = vld [vmem:[%s3578_s1 + $0xd8] sm:$0xff]  ;;  %v65_v17 = vld [vmem:[%s3578_s1 + $0x90] sm:$0xff]  ;;  %v55_v18 = vld [vmem:[%s3578_s1 + $0x40] sm:$0xff]  ;;  %v2211_v44 = vshrl.u32 %v879_v42, 7  ;;  %v2213_v45 = vand.u32 127, %v879_v42  ;;  %s1977_s26 = smov [#allocation3]  }
   0xe   :  { %1796 = vmatpush.msra.mxu3 %v150_v9  ;;  %1700 = vmatmul.msk.f32.vlgmr.msra.gmra.mxu2 %vm88_vm0, %v64_v11  ;;  %v75_v19 = vld [vmem:[%s3578_s1 + $0xe0] sm:$0xff]  ;;  %v56_v20 = vld [vmem:[%s3578_s1 + $0x48] sm:$0xff]  ;;  %v66_v22 = vld [vmem:[%s3578_s1 + $0x98] sm:$0xff]  ;;  %s1650_s3 = sshll.u32 %s1977_s26, 4  ;;  %s1978_s27 = smov [#allocation5]   ;;  %s1651_s3 = int_to_ptr.vmem [resolvable:$true] %s1650_s3 }
   0xf   :  { %1709 = vmatmul.msk.f32.vlgmr.msra.gmra.mxu3 %vm88_vm0, %v73_v12  ;;  %266 = vmatpush.msrb.mxu0 %v153_v4  ;;  %v76_v21 = vld [vmem:[%s3578_s1 + $0xe8] sm:$0xff]  ;;  %v67_v24 = vld [vmem:[%s3578_s1 + $0xa0] sm:$0xff]  ;;  %v49_v25 = vld [vmem:[%s3578_s1 + $0x10] sm:$0xff]  ;;  %3640 = vst [vmem:[#allocation9_spill] sm:$0xff] %v2211_v44  ;;  %v883_v46 = vmul.u32 8, %v2211_v44  ;;  %v885_v47 = vadd.s32 1, %v2211_v44 }
  0x10   :  { %945 = vmatpush.msrb.mxu3 %v46_v13  ;;  %v48_v23 = vld [vmem:[%s3578_s1 + $0x8] sm:$0xff]  ;;  %v57_v26 = vld [vmem:[%s3578_s1 + $0x50] sm:$0xff]  ;;  %v58_v29 = vld [vmem:[%s3578_s1 + $0x58] sm:$0xff]  ;;  %3641 = vst [vmem:[#allocation10_spill] sm:$0xff] %v2213_v45  ;;  %s1661_s28 = sshll.u32 %s1978_s27, 4  ;;  %s1662_s28 = int_to_ptr.vmem [resolvable:$true] %s1661_s28 }
  0x11   :  { %267 = vmatpush.msrb.mxu0 %v152_v5  ;;  %v77_v27 = vld [vmem:[%s3578_s1 + $0xf0] sm:$0xff]  ;;  %v68_v28 = vld [vmem:[%s3578_s1 + $0xa8] sm:$0xff]  ;;  %v78_v30 = vld [vmem:[%s3578_s1 + $0xf8] sm:$0xff]  ;;  %vm884_vm1 = vcmp.ge.s32.totalorder %v2213_v45, %v883_v46  ;;  %v886_v48 = vmul.u32 8, %v885_v47 }
  0x12   :  { %946 = vmatpush.msrb.mxu3 %v45_v8  ;;  %v69_v31 = vld [vmem:[%s3578_s1 + $0xb0] sm:$0xff]  ;;  %v50_v32 = vld [vmem:[%s3578_s1 + $0x18] sm:$0xff]  ;;  %v51_v34 = vld [vmem:[%s3578_s1 + $0x20] sm:$0xff] }
  0x13   :  { %1682 = vmatmul.msk.f32.gmra.mxu0 %vm88_vm0, %v46_v13  ;;  %v70_v33 = vld [vmem:[%s3578_s1 + $0xb8] sm:$0xff]  ;;  %v59_v35 = vld [vmem:[%s3578_s1 + $0x60] sm:$0xff]  ;;  %v52_v36 = vld [vmem:[%s3578_s1 + $0x28] sm:$0xff]  ;;  %vm887_vm2 = vcmp.lt.s32.totalorder %v2213_v45, %v886_v48 }
  0x14   :  { %268 = vmatpush.msrb.mxu0 %v151_v7  ;;  %v60_v37 = vld [vmem:[%s3578_s1 + $0x68] sm:$0xff]  ;;  %v71_v38 = vld [vmem:[%s3578_s1 + $0xc0] sm:$0xff]  ;;  %v61_v39 = vld [vmem:[%s3578_s1 + $0x70] sm:$0xff] }
  0x15   :  { %1690 = vmatmul.msk.f32.gmra.mxu1 %vm88_vm0, %v54_v14  ;;  %v72_v40 = vld [vmem:[%s3578_s1 + $0xc8] sm:$0xff]  ;;  %v62_v41 = vld [vmem:[%s3578_s1 + $0x78] sm:$0xff]  ;;  %v63_v43 = vld [vmem:[%s3578_s1 + $0x80] sm:$0xff]  ;;  %s1663_s1 = sshll.u32 %s3589_s12, 4  ;;  %s1664_s1 = int_to_ptr.hbm [resolvable:$true] %s1663_s1 }
  0x16   :  { %269 = vmatpush.msrb.mxu0 %v150_v9  ;;  %1701 = vmatmul.msk.f32.gmra.mxu2 %vm88_vm0, %v65_v17  ;;  %vm888_vm4 = vmand %vm884_vm1, %vm887_vm2  ;;  %v2223_v49 = vld [vmem:[%s3583_s6] ss:$0 sm:$0xff] }
  0x17   :  { %1710 = vmatmul.msk.f32.gmra.mxu3 %vm88_vm0, %v74_v15  ;;  %v2226_v52 = vsel %vm888_vm4, 0.125, %v3591_v51  ;;  %v1842_v56 = vld [vmem:[%s3581_s4] ss:$0 sm:$0xff] }
  0x18   :  { %v79_v10 = vld [vmem:[%s3579_s2] sm:$0x3] }
  0x19   :  { %v1283_v13 = vsel %vm1251_vm5, %v79_v10, 0.0 }
  0x1b   :  { %1683 = vmatmul.msk.f32.vlgmr.msrb.gmra.mxu0 %vm88_vm0, %v47_v16 }
  0x1d   :  { %1691 = vmatmul.msk.f32.gmra.mxu1 %vm88_vm0, %v55_v18 }
  0x1e   :  { %1702 = vmatmul.msk.f32.gmra.mxu2 %vm88_vm0, %v66_v22 }
  0x1f   :  { %1711 = vmatmul.msk.f32.gmra.mxu3 %vm88_vm0, %v75_v19 }
  0x23   :  { %1684 = vmatmul.msk.f32.gmra.mxu0 %vm88_vm0, %v48_v23 }
  0x25   :  { %1692 = vmatmul.msk.f32.gmra.mxu1 %vm88_vm0, %v56_v20 }
  0x26   :  { %1703 = vmatmul.msk.f32.gmra.mxu2 %vm88_vm0, %v67_v24 }
  0x27   :  { %1712 = vmatmul.msk.f32.gmra.mxu3 %vm88_vm0, %v76_v21 }
  0x2b   :  { %1685 = vmatmul.msk.f32.gmra.mxu0 %vm88_vm0, %v49_v25 }
  0x2d   :  { %1693 = vmatmul.msk.f32.gmra.mxu1 %vm88_vm0, %v57_v26 }
  0x2e   :  { %1704 = vmatmul.msk.f32.gmra.mxu2 %vm88_vm0, %v68_v28 }
  0x2f   :  { %1713 = vmatmul.msk.f32.gmra.mxu3 %vm88_vm0, %v77_v27 }
  0x33   :  { %1686 = vmatmul.msk.f32.gmra.mxu0 %vm88_vm0, %v50_v32 }
  0x35   :  { %1694 = vmatmul.msk.f32.gmra.mxu1 %vm88_vm0, %v58_v29 }
  0x36   :  { %1705 = vmatmul.msk.f32.gmra.mxu2 %vm88_vm0, %v69_v31 }
  0x37   :  { %1714 = vmatmul.msk.f32.gmra.mxu3 %vm88_vm0, %v78_v30 }
  0x3b   :  { %1687 = vmatmul.msk.f32.gmra.mxu0 %vm88_vm0, %v51_v34 }
  0x3d   :  { %1695 = vmatmul.msk.f32.gmra.mxu1 %vm88_vm0, %v59_v35 }
  0x3e   :  { %1706 = vmatmul.msk.f32.gmra.mxu2 %vm88_vm0, %v70_v33 }
  0x3f   :  { %1716 = vmatmul.msk.f32.vlgmr.msrb.gmra.mxu3 %vm890_vm3, %v2226_v52 }
  0x43   :  { %1688 = vmatmul.msk.f32.gmra.mxu0 %vm88_vm0, %v52_v36 }
  0x45   :  { %1696 = vmatmul.msk.f32.gmra.mxu1 %vm88_vm0, %v60_v37 }
  0x46   :  { %1707 = vmatmul.msk.f32.gmra.mxu2 %vm88_vm0, %v71_v38 }
  0x4d   :  { %1697 = vmatmul.msk.f32.gmra.mxu1 %vm88_vm0, %v61_v39 }
  0x4e   :  { %1708 = vmatmul.msk.f32.gmra.mxu2 %vm88_vm0, %v72_v40 }
  0x55   :  { %1698 = vmatmul.msk.f32.gmra.mxu1 %vm88_vm0, %v62_v41 }
  0x5d   :  { %1699 = vmatmul.msk.f32.gmra.mxu1 %vm88_vm0, %v63_v43 }
  0x88   :  { %v112_v50 = vpop.f32.mrf.mxu0 }
  0x89   :  { %v2251_v2 = vadd.f32 %v1842_v56, %v112_v50 }
  0x8a   :  { %v289_v53 = vpop.f32.mrf.mxu1 }
  0x8b   :  { %v2231_v54 = vadd.f32 %v2223_v49, %v289_v53  ;;  %v118_v8 = vmul.f32 %v2251_v2, %v2251_v2 }
  0x8d   :  { %v373_v55 = vmul.f32 %v2231_v54, %v2231_v54  ;;  %v120_v12 = vsel %vm88_vm0, %v118_v8, 0.0 }
  0x8f   :  { %v417_v57 = vsel %vm88_vm0, %v373_v55, 0.0 }
  0x90   :  { %v115_v58 = vpop.f32.mrf.mxu0  ;;  %418 = vadd.xlane.f32.xlu2 %v417_v57 }
  0x91   :  { %v2239_v59 = vadd.f32 %v1842_v56, %v115_v58  ;;  %v322_v60 = vpop.f32.mrf.mxu2 }
  0x92   :  { %v2242_v61 = vadd.f32 %v2223_v49, %v322_v60  ;;  %v349_v62 = vpop.f32.mrf.mxu3  ;;  %v292_v15 = vpop.f32.mrf.mxu1 }
  0x93   :  { %v119_v63 = vmul.f32 %v2239_v59, %v2239_v59  ;;  %v2247_v0 = vadd.f32 %v2223_v49, %v349_v62  ;;  %v2272_v17 = vadd.f32 %v2223_v49, %v292_v15 }
  0x94   :  { %3642 = vst [vmem:[#allocation11_spill] sm:$0xff] %v2242_v61  ;;  %v384_v1 = vmul.f32 %v2242_v61, %v2242_v61 }
  0x95   :  { %3643 = vst [vmem:[#allocation12_spill] sm:$0xff] %v2247_v0  ;;  %v123_v3 = vsel %vm88_vm0, %v119_v63, 0.0  ;;  %v393_v4 = vmul.f32 %v2247_v0, %v2247_v0  ;;  %v374_v24 = vmul.f32 %v2272_v17, %v2272_v17 }
  0x96   :  { %124 = vadd.xlane.f32.xlu0 %v123_v3  ;;  %v450_v5 = vsel %vm88_vm0, %v384_v1, 0.0 }
  0x97   :  { %451 = vadd.xlane.f32.xlu1 %v450_v5  ;;  %v477_v6 = vsel %vm88_vm0, %v393_v4, 0.0  ;;  %v420_v27 = vsel %vm88_vm0, %v374_v24, 0.0 }
  0x98   :  { %478 = vadd.xlane.f32.xlu2 %v477_v6  ;;  %v271_v7 = vpop.f32.mrf.mxu0 }
  0x99   :  { %v2261_v9 = vadd.f32 %v2223_v49, %v271_v7  ;;  %v325_v19 = vpop.f32.mrf.mxu2 }
  0x9a   :  { %v352_v16 = vpop.f32.mrf.mxu3  ;;  %v295_v18 = vpop.f32.mrf.mxu1  ;;  %v2278_v21 = vadd.f32 %v2223_v49, %v325_v19 }
  0x9b   :  { %v367_v11 = vmul.f32 %v2261_v9, %v2261_v9  ;;  %v2275_v20 = vadd.f32 %v2223_v49, %v295_v18  ;;  %v2290_v28 = vadd.f32 %v2223_v49, %v352_v16 }
  0x9c   :  { %3644 = vst [vmem:[#allocation13_spill] sm:$0xff] %v2278_v21  ;;  %v385_v22 = vmul.f32 %v2278_v21, %v2278_v21 }
  0x9d   :  { %v399_v14 = vsel %vm88_vm0, %v367_v11, 0.0  ;;  %v375_v23 = vmul.f32 %v2275_v20, %v2275_v20  ;;  %3645 = vst [vmem:[#allocation14_spill] sm:$0xff] %v2290_v28  ;;  %v394_v35 = vmul.f32 %v2290_v28, %v2290_v28 }
  0x9e   :  { %121 = vadd.xlane.f32.xlu0 %v120_v12  ;;  %v453_v25 = vsel %vm88_vm0, %v385_v22, 0.0 }
  0x9f   :  { %400 = vadd.xlane.f32.xlu1 %v399_v14  ;;  %v423_v26 = vsel %vm88_vm0, %v375_v23, 0.0  ;;  %v480_v38 = vsel %vm88_vm0, %v394_v35, 0.0 }
  0xa0   :  { %1284 = vadd.xlane.f32.xlu2 %v1283_v13  ;;  %v274_v40 = vpop.f32.mrf.mxu0 }
  0xa1   :  { %v2311_v42 = vadd.f32 %v2223_v49, %v274_v40  ;;  %v328_v43 = vpop.f32.mrf.mxu2 }
  0xa2   :  { %v355_v29 = vpop.f32.mrf.mxu3  ;;  %v298_v30 = vpop.f32.mrf.mxu1  ;;  %v2314_v46 = vadd.f32 %v2223_v49, %v328_v43 }
  0xa3   :  { %v2293_v31 = vadd.f32 %v2223_v49, %v355_v29  ;;  %v2296_v32 = vadd.f32 %v2223_v49, %v298_v30  ;;  %v368_v48 = vmul.f32 %v2311_v42, %v2311_v42 }
  0xa4   :  { %3648 = vst [vmem:[#allocation17_spill] sm:$0xff] %v2314_v46  ;;  %v386_v50 = vmul.f32 %v2314_v46, %v2314_v46 }
  0xa5   :  { %3646 = vst [vmem:[#allocation15_spill] sm:$0xff] %v2293_v31  ;;  %v376_v33 = vmul.f32 %v2296_v32, %v2296_v32  ;;  %v395_v34 = vmul.f32 %v2293_v31, %v2293_v31  ;;  %v402_v55 = vsel %vm88_vm0, %v368_v48, 0.0 }
  0xa6   :  { %421 = vadd.xlane.f32.xlu0 %v420_v27  ;;  %v456_v56 = vsel %vm88_vm0, %v386_v50, 0.0 }
  0xa7   :  { %424 = vadd.xlane.f32.xlu1 %v423_v26  ;;  %v426_v36 = vsel %vm88_vm0, %v376_v33, 0.0  ;;  %v483_v37 = vsel %vm88_vm0, %v395_v34, 0.0 }
  0xa8   :  { %454 = vadd.xlane.f32.xlu2 %v453_v25  ;;  %v277_v57 = vpop.f32.mrf.mxu0 }
  0xa9   :  { %v2326_v60 = vadd.f32 %v2223_v49, %v277_v57  ;;  %v331_v63 = vpop.f32.mrf.mxu2 }
  0xaa   :  { %v358_v39 = vpop.f32.mrf.mxu3  ;;  %v301_v58 = vpop.f32.mrf.mxu1  ;;  %v2332_v1 = vadd.f32 %v2223_v49, %v331_v63 }
  0xab   :  { %v2308_v41 = vadd.f32 %v2223_v49, %v358_v39  ;;  %v2329_v62 = vadd.f32 %v2223_v49, %v301_v58  ;;  %v369_v3 = vmul.f32 %v2326_v60, %v2326_v60 }
  0xac   :  { %3650 = vst [vmem:[#allocation19_spill] sm:$0xff] %v2332_v1  ;;  %v387_v5 = vmul.f32 %v2332_v1, %v2332_v1 }
  0xad   :  { %3647 = vst [vmem:[#allocation16_spill] sm:$0xff] %v2308_v41  ;;  %v396_v47 = vmul.f32 %v2308_v41, %v2308_v41  ;;  %v377_v4 = vmul.f32 %v2329_v62, %v2329_v62  ;;  %v405_v6 = vsel %vm88_vm0, %v369_v3, 0.0 }
  0xae   :  { %481 = vadd.xlane.f32.xlu0 %v480_v38  ;;  %3649 = vst [vmem:[#allocation18_spill] sm:$0xff] %v2329_v62  ;;  %v459_v8 = vsel %vm88_vm0, %v387_v5, 0.0 }
  0xaf   :  { %484 = vadd.xlane.f32.xlu1 %v483_v37  ;;  %v486_v53 = vsel %vm88_vm0, %v396_v47, 0.0  ;;  %v429_v7 = vsel %vm88_vm0, %v377_v4, 0.0 }
  0xb0   :  { %427 = vadd.xlane.f32.xlu2 %v426_v36  ;;  %v280_v26 = vpop.f32.mrf.mxu0 }
  0xb1   :  { %v334_v14 = vpop.f32.mrf.mxu2  ;;  %v2365_v29 = vadd.f32 %v2223_v49, %v280_v26 }
  0xb2   :  { %v361_v10 = vpop.f32.mrf.mxu3  ;;  %v304_v11 = vpop.f32.mrf.mxu1  ;;  %v2350_v15 = vadd.f32 %v2223_v49, %v334_v14 }
  0xb3   :  { %v2344_v12 = vadd.f32 %v2223_v49, %v361_v10  ;;  %v2347_v13 = vadd.f32 %v2223_v49, %v304_v11  ;;  %v370_v34 = vmul.f32 %v2365_v29, %v2365_v29 }
  0xb4   :  { %3653 = vst [vmem:[#allocation22_spill] sm:$0xff] %v2350_v15  ;;  %v388_v19 = vmul.f32 %v2350_v15, %v2350_v15 }
  0xb5   :  { %3651 = vst [vmem:[#allocation20_spill] sm:$0xff] %v2344_v12  ;;  %v378_v16 = vmul.f32 %v2347_v13, %v2347_v13  ;;  %v397_v18 = vmul.f32 %v2344_v12, %v2344_v12  ;;  %v408_v37 = vsel %vm88_vm0, %v370_v34, 0.0 }
  0xb6   :  { %457 = vadd.xlane.f32.xlu0 %v456_v56  ;;  %3652 = vst [vmem:[#allocation21_spill] sm:$0xff] %v2347_v13  ;;  %v462_v24 = vsel %vm88_vm0, %v388_v19, 0.0 }
  0xb7   :  { %403 = vadd.xlane.f32.xlu1 %v402_v55  ;;  %v432_v22 = vsel %vm88_vm0, %v378_v16, 0.0  ;;  %v489_v23 = vsel %vm88_vm0, %v397_v18, 0.0 }
  0xb8   :  { %487 = vadd.xlane.f32.xlu2 %v486_v53  ;;  %v283_v40 = vpop.f32.mrf.mxu0 }
  0xb9   :  { %v337_v30 = vpop.f32.mrf.mxu2  ;;  %v2380_v47 = vadd.f32 %v2223_v49, %v283_v40 }
  0xba   :  { %v364_v25 = vpop.f32.mrf.mxu3  ;;  %v2368_v33 = vadd.f32 %v2223_v49, %v337_v30  ;;  %v307_v43 = vpop.f32.mrf.mxu1 }
  0xbb   :  { %v2362_v27 = vadd.f32 %v2223_v49, %v364_v25  ;;  %v2383_v48 = vadd.f32 %v2223_v49, %v307_v43  ;;  %v371_v56 = vmul.f32 %v2380_v47, %v2380_v47 }
  0xbc   :  { %3655 = vst [vmem:[#allocation24_spill] sm:$0xff] %v2368_v33  ;;  %v389_v36 = vmul.f32 %v2368_v33, %v2368_v33 }
  0xbd   :  { %3654 = vst [vmem:[#allocation23_spill] sm:$0xff] %v2362_v27  ;;  %v398_v35 = vmul.f32 %v2362_v27, %v2362_v27  ;;  %v379_v55 = vmul.f32 %v2383_v48, %v2383_v48  ;;  %v411_v63 = vsel %vm88_vm0, %v371_v56, 0.0 }
  0xbe   :  { %430 = vadd.xlane.f32.xlu0 %v429_v7  ;;  %v465_v39 = vsel %vm88_vm0, %v389_v36, 0.0  ;;  %3656 = vst [vmem:[#allocation25_spill] sm:$0xff] %v2383_v48 }
  0xbf   :  { %460 = vadd.xlane.f32.xlu1 %v459_v8  ;;  %v492_v38 = vsel %vm88_vm0, %v398_v35, 0.0  ;;  %v435_v58 = vsel %vm88_vm0, %v379_v55, 0.0 }
  0xc0   :  { %406 = vadd.xlane.f32.xlu2 %v405_v6  ;;  %v286_v4 = vpop.f32.mrf.mxu0 }
  0xc1   :  { %v340_v50 = vpop.f32.mrf.mxu2  ;;  %v2398_v6 = vadd.f32 %v2223_v49, %v286_v4 }
  0xc2   :  { %v2386_v53 = vadd.f32 %v2223_v49, %v340_v50  ;;  %v310_v5 = vpop.f32.mrf.mxu1 }
  0xc3   :  { %v2401_v7 = vadd.f32 %v2223_v49, %v310_v5  ;;  %v372_v8 = vmul.f32 %v2398_v6, %v2398_v6 }
  0xc4   :  { %3657 = vst [vmem:[#allocation26_spill] sm:$0xff] %v2386_v53  ;;  %v390_v57 = vmul.f32 %v2386_v53, %v2386_v53 }
  0xc5   :  { %3658 = vst [vmem:[#allocation27_spill] sm:$0xff] %v2401_v7  ;;  %v380_v10 = vmul.f32 %v2401_v7, %v2401_v7  ;;  %v414_v11 = vsel %vm88_vm0, %v372_v8, 0.0 }
  0xc6   :  { %490 = vadd.xlane.f32.xlu0 %v489_v23  ;;  %v468_v3 = vsel %vm88_vm0, %v390_v57, 0.0 }
  0xc7   :  { %433 = vadd.xlane.f32.xlu1 %v432_v22  ;;  %v438_v14 = vsel %vm88_vm0, %v380_v10, 0.0 }
  0xc8   :  { %463 = vadd.xlane.f32.xlu2 %v462_v24 }
  0xc9   :  { %v343_v19 = vpop.f32.mrf.mxu2 }
  0xca   :  { %v313_v16 = vpop.f32.mrf.mxu1  ;;  %v2413_v22 = vadd.f32 %v2223_v49, %v343_v19 }
  0xcb   :  { %v2410_v18 = vadd.f32 %v2223_v49, %v313_v16 }
  0xcc   :  { %3660 = vst [vmem:[#allocation29_spill] sm:$0xff] %v2413_v22  ;;  %v391_v25 = vmul.f32 %v2413_v22, %v2413_v22 }
  0xcd   :  { %3659 = vst [vmem:[#allocation28_spill] sm:$0xff] %v2410_v18  ;;  %v381_v23 = vmul.f32 %v2410_v18, %v2410_v18 }
  0xce   :  { %466 = vadd.xlane.f32.xlu0 %v465_v39  ;;  %v471_v26 = vsel %vm88_vm0, %v391_v25, 0.0 }
  0xcf   :  { %493 = vadd.xlane.f32.xlu1 %v492_v38  ;;  %v441_v24 = vsel %vm88_vm0, %v381_v23, 0.0 }
  0xd0   :  { %409 = vadd.xlane.f32.xlu2 %v408_v37 }
  0xd1   :  { %v346_v35 = vpop.f32.mrf.mxu2 }
  0xd2   :  { %v316_v30 = vpop.f32.mrf.mxu1  ;;  %v2425_v36 = vadd.f32 %v2223_v49, %v346_v35 }
  0xd3   :  { %v2422_v34 = vadd.f32 %v2223_v49, %v316_v30 }
  0xd4   :  { %3662 = vst [vmem:[#allocation31_spill] sm:$0xff] %v2425_v36  ;;  %v392_v39 = vmul.f32 %v2425_v36, %v2425_v36 }
  0xd5   :  { %3661 = vst [vmem:[#allocation30_spill] sm:$0xff] %v2422_v34  ;;  %v382_v37 = vmul.f32 %v2422_v34, %v2422_v34 }
  0xd6   :  { %412 = vadd.xlane.f32.xlu0 %v411_v63  ;;  %v474_v40 = vsel %vm88_vm0, %v392_v39, 0.0  ;;  %v1215_v39 = vld [vmem:[%s3584_s7 + $0x8] sm:$0xff] }
  0xd7   :  { %469 = vadd.xlane.f32.xlu1 %v468_v3  ;;  %v444_v38 = vsel %vm88_vm0, %v382_v37, 0.0 }
  0xd8   :  { %436 = vadd.xlane.f32.xlu2 %v435_v58 }
  0xde   :  { %439 = vadd.xlane.f32.xlu0 %v438_v14 }
  0xdf   :  { %415 = vadd.xlane.f32.xlu1 %v414_v11  ;;  %v319_v11 = vpop.f32.mrf.mxu1 }
  0xe0   :  { %445 = vadd.xlane.f32.xlu2 %v444_v38  ;;  %v2435_v23 = vadd.f32 %v2223_v49, %v319_v11  ;;  %v1217_v49 = vld [vmem:[%s3584_s7 + $0x18] sm:$0xff] }
  0xe2   :  { %3663 = vst [vmem:[#allocation32_spill] sm:$0xff] %v2435_v23 }
  0xe6   :  { %472 = vadd.xlane.f32.xlu0 %v471_v26  ;;  %v383_v26 = vmul.f32 %v2435_v23, %v2435_v23 }
  0xe7   :  { %442 = vadd.xlane.f32.xlu1 %v441_v24 }
  0xe8   :  { %v447_v35 = vsel %vm88_vm0, %v383_v26, 0.0 }
  0xee   :  { %448 = vadd.xlane.f32.xlu0 %v447_v35 }
  0xef   :  { %475 = vadd.xlane.f32.xlu1 %v474_v40  ;;  %v948_v40 = vpop.f32.mrf.mxu3 }
 0x109   :  { %v125_v43 = vpop.xlane.xlu0 %124 }
 0x10a   :  { %v127_v50 = vmax.f32 %v125_v43, 1e-24 }
 0x10c   :  { %1847 = vrsqrt.f32 %v127_v50  ;;  %vm144_vm7 = vweird.f32 %v127_v50 }
 0x111   :  { %v122_v55 = vpop.xlane.xlu0 %121 }
 0x112   :  { %v1848_v56 = vpop.eup %1847  ;;  %v126_v57 = vmax.f32 %v122_v55, 1e-24  ;;  %v1844_v55 = vld [vmem:[%s3585_s8] ss:$0 sm:$0xff] }
 0x113   :  { %v139_v58 = vmul.f32 %v1848_v56, %v127_v50  ;;  %vm145_vm6 = vweird.f32 %v1848_v56 }
 0x114   :  { %1849 = vrsqrt.f32 %v126_v57  ;;  %vm146_vm8 = vmor %vm144_vm7, %vm145_vm6  ;;  %vm134_vm10 = vweird.f32 %v126_v57 }
 0x115   :  { %v140_v63 = vmul.f32 %v1848_v56, %v139_v58  ;;  %v1845_v58 = vld [vmem:[%s3586_s9] ss:$0 sm:$0xff] }
 0x117   :  { %v141_v3 = vmul.f32 0.5, %v140_v63 }
 0x119   :  { %v142_v4 = vsub.f32 1.5, %v141_v3  ;;  %v419_v3 = vpop.xlane.xlu2 %418 }
 0x11a   :  { %v1850_v5 = vpop.eup %1849 }
 0x11b   :  { %v129_v8 = vmul.f32 %v1850_v5, %v126_v57  ;;  %v143_v10 = vmul.f32 %v1848_v56, %v142_v4  ;;  %vm135_vm9 = vweird.f32 %v1850_v5 }
 0x11c   :  { %vm136_vm11 = vmor %vm134_vm10, %vm135_vm9 }
 0x11d   :  { %v130_v14 = vmul.f32 %v1850_v5, %v129_v8  ;;  %v147_v16 = vsel %vm146_vm8, %v1848_v56, %v143_v10  ;;  %v452_v8 = vpop.xlane.xlu1 %451 }
 0x11e   :  { %v149_v19 = vmul.f32 %v147_v16, %v2239_v59  ;;  %v1216_v59 = vld [vmem:[%s3584_s7 + $0x10] sm:$0xff] }
 0x11f   :  { %v131_v24 = vmul.f32 0.5, %v130_v14 }
 0x120   :  { %908 = vmatpush.msrb.mxu2 %v149_v19 }
 0x121   :  { %v132_v25 = vsub.f32 1.5, %v131_v24  ;;  %v479_v10 = vpop.xlane.xlu2 %478  ;;  %v422_v24 = vpop.xlane.xlu0 %421 }
 0x123   :  { %v133_v30 = vmul.f32 %v1850_v5, %v132_v25 }
 0x125   :  { %v137_v37 = vsel %vm136_vm11, %v1850_v5, %v133_v30  ;;  %v401_v11 = vpop.xlane.xlu1 %400 }
 0x126   :  { %v148_v38 = vmul.f32 %v137_v37, %v2251_v2  ;;  %v1214_v2 = vld [vmem:[%s3584_s7] sm:$0xff] }
 0x128   :  { %909 = vmatpush.msrb.mxu2 %v148_v38 }
 0x129   :  { %1715 = vmatmul.msk.f32.vlgmr.msrb.gmra.mxu2 %vm890_vm3, %v2226_v52  ;;  %v2467_v14 = vpop.xlane.xlu2 %1284  ;;  %v2471_v30 = vpop.xlane.xlu0 %481 }
 0x12a   :  { %1237 = vmatpush.msra.mxu2 %v1217_v49  ;;  %3664 = vst [vmem:[#allocation33_spill] sm:$0xff] %v2467_v14 }
 0x12c   :  { %1238 = vmatpush.msra.mxu2 %v1216_v59 }
 0x12d   :  { %v425_v16 = vpop.xlane.xlu1 %424 }
 0x12e   :  { %1239 = vmatpush.msra.mxu2 %v1215_v39 }
 0x130   :  { %1240 = vmatpush.msra.mxu2 %v1214_v2 }
 0x131   :  { %1717 = vmatmul.msk.f32.vlgmr.msra.gmra.mxu2 %vm88_vm0, %v948_v40  ;;  %v455_v19 = vpop.xlane.xlu2 %454  ;;  %v2475_v38 = vpop.xlane.xlu0 %457 }
 0x132   :  { %v2514_v45 = vmax.f32 %v455_v19, 1e-24 }
 0x134   :  { %3670 = vst [vmem:[#allocation39_spill] sm:$0xff] %v2514_v45 }
 0x135   :  { %v2469_v25 = vpop.xlane.xlu1 %484 }
 0x136   :  { %v2568_v33 = vmax.f32 %v2469_v25, 1e-24 }
 0x138   :  { %3675 = vst [vmem:[#allocation44_spill] sm:$0xff] %v2568_v33 }
 0x139   :  { %v428_v26 = vpop.xlane.xlu2 %427  ;;  %v2479_v39 = vpop.xlane.xlu0 %430 }
 0x13a   :  { %v2533_v27 = vmax.f32 %v428_v26, 1e-24 }
 0x13d   :  { %v404_v35 = vpop.xlane.xlu1 %403 }
 0x13e   :  { %v2507_v14 = vmax.f32 %v404_v35, 1e-24 }
 0x140   :  { %vm543_vm3 = vweird.f32 %v2507_v14 }
 0x141   :  { %v2473_v37 = vpop.xlane.xlu2 %487 }
 0x145   :  { %v2477_v49 = vpop.xlane.xlu1 %460 }
 0x149   :  { %v407_v59 = vpop.xlane.xlu2 %406 }
 0x14d   :  { %v2481_v2 = vpop.xlane.xlu1 %433 }
 0x151   :  { %v2483_v40 = vpop.xlane.xlu2 %463 }
 0x1ac   :  { %v2456_v52 = vpop.f32.mrf.mxu2 }
 0x1ad   :  { %v914_v43 = vmul.f32 %v2456_v52, %v2456_v52 }
 0x1af   :  { %v916_v50 = vsel %vm915_vm12, %v914_v43, 0.0  ;;  %v2485_v43 = vpop.xlane.xlu0 %490 }
 0x1b0   :  { %917 = vadd.xlane.f32.xlu2 %v916_v50  ;;  %3665 = vst [vmem:[#allocation34_spill] sm:$0xff] %v2485_v43  ;;  %v2487_v50 = vmax.f32 %v419_v3, 1e-24  ;;  %v2505_v3 = vmax.f32 %v425_v16, 1e-24 }
 0x1b1   :  { %v2522_v16 = vmax.f32 %v422_v24, 1e-24 }
 0x1b2   :  { %1851 = vrsqrt.f32 %v2487_v50  ;;  %vm593_vm13 = vweird.f32 %v2487_v50 }
 0x1b3   :  { %vm603_vm11 = vweird.f32 %v2522_v16 }
 0x1b4   :  { %v1242_v56 = vpop.f32.mrf.mxu2 }
 0x1b5   :  { %v1243_v57 = vadd.f32 %v1844_v55, %v1242_v56  ;;  %v2489_v55 = vpop.xlane.xlu1 %493  ;;  %v410_v56 = vpop.xlane.xlu2 %409 }
 0x1b6   :  { %3666 = vst [vmem:[#allocation35_spill] sm:$0xff] %v2489_v55  ;;  %v2548_v36 = vmax.f32 %v410_v56, 1e-24 }
 0x1b7   :  { %v1245_v63 = vmax.f32 %v1243_v57, 0.0  ;;  %v2492_v57 = vmax.f32 %v452_v8, 1e-24 }
 0x1b9   :  { %v1250_v4 = vmul.f32 %v1845_v58, %v1245_v63  ;;  %3667 = vst [vmem:[#allocation36_spill] sm:$0xff] %v2492_v57  ;;  %v2494_v58 = vpop.xlane.xlu0 %466  ;;  %1853 = vrsqrt.f32 %v2492_v57  ;;  %v2497_v63 = vmax.f32 %v479_v10, 1e-24  ;;  %v2517_v10 = vmax.f32 %v407_v59, 1e-24 }
 0x1bb   :  { %v1252_v5 = vsel %vm1251_vm5, %v1250_v4, 0.0  ;;  %3668 = vst [vmem:[#allocation37_spill] sm:$0xff] %v2497_v63  ;;  %v2499_v4 = vpop.eup %1851  ;;  %1855 = vrsqrt.f32 %v2497_v63  ;;  %vm553_vm5 = vweird.f32 %v2517_v10 }
 0x1bc   :  { %1253 = vadd.xlane.f32.xlu1 %v1252_v5  ;;  %v2501_v5 = vmax.f32 %v401_v11, 1e-24  ;;  %v588_v8 = vmul.f32 %v2499_v4, %v2487_v50  ;;  %vm594_vm14 = vweird.f32 %v2499_v4 }
 0x1bd   :  { %v2503_v51 = vpop.xlane.xlu1 %469  ;;  %v2509_v44 = vpop.xlane.xlu2 %436  ;;  %vm2598_vm15 = vmor %vm593_vm13, %vm594_vm14 }
 0x1be   :  { %3669 = vst [vmem:[#allocation38_spill] sm:$0xff] %v2503_v51  ;;  %1857 = vrsqrt.f32 %v2501_v5  ;;  %v589_v41 = vmul.f32 %v2499_v4, %v588_v8  ;;  %vm533_vm1 = vweird.f32 %v2501_v5 }
 0x1bf   :  { %v2519_v11 = vpop.eup %1853  ;;  %1859 = vrsqrt.f32 %v2505_v3 }
 0x1c0   :  { %3671 = vst [vmem:[#allocation40_spill] sm:$0xff] %v2519_v11  ;;  %1861 = vrsqrt.f32 %v2507_v14  ;;  %v698_v19 = vmul.f32 %v2519_v11, %v2492_v57  ;;  %v590_v53 = vmul.f32 0.5, %v589_v41  ;;  %v2623_v57 = vmax.f32 %v2471_v30, 1e-24 }
 0x1c1   :  { %v413_v35 = vpop.xlane.xlu0 %412  ;;  %1863 = vrsqrt.f32 %v2514_v45  ;;  %v2530_v59 = vpop.eup %1855 }
 0x1c2   :  { %1865 = vrsqrt.f32 %v2517_v10  ;;  %3672 = vst [vmem:[#allocation41_spill] sm:$0xff] %v2530_v59  ;;  %v2537_v0 = vmax.f32 %v413_v35, 1e-24  ;;  %v699_v1 = vmul.f32 %v2519_v11, %v698_v19  ;;  %v591_v61 = vsub.f32 1.5, %v590_v53 }
 0x1c3   :  { %1867 = vrsqrt.f32 %v2522_v16  ;;  %v788_v53 = vmul.f32 %v2530_v59, %v2497_v63  ;;  %v2589_v63 = vmax.f32 %v2475_v38, 1e-24  ;;  %v2606_v38 = vmax.f32 %v2479_v39, 1e-24  ;;  %3679 = vst [vmem:[#allocation46_spill] sm:$0xff] %v2623_v57 }
 0x1c4   :  { %v2535_v24 = vpop.eup %1857  ;;  %1869 = vrsqrt.f32 %v2533_v27  ;;  %v2565_v19 = vmul.f32 0.5, %v699_v1  ;;  %vm573_vm14 = vweird.f32 %v2537_v0 }
 0x1c5   :  { %v416_v12 = vpop.xlane.xlu1 %415  ;;  %v2539_v28 = vpop.xlane.xlu2 %445  ;;  %v528_v15 = vmul.f32 %v2535_v24, %v2501_v5  ;;  %1871 = vrsqrt.f32 %v2537_v0  ;;  %vm534_vm2 = vweird.f32 %v2535_v24  ;;  %v2786_v5 = vmax.f32 %v2477_v49, 1e-24 }
 0x1c6   :  { %v2541_v8 = vpop.eup %1859  ;;  %v2543_v31 = vmax.f32 %v416_v12, 1e-24  ;;  %3674 = vst [vmem:[#allocation43_spill] sm:$0xff] %v2565_v19  ;;  %vm2685_vm6 = vmor %vm533_vm1, %vm534_vm2  ;;  %vm613_vm2 = vweird.f32 %v2505_v3 }
 0x1c7   :  { %v2545_v22 = vpop.eup %1861  ;;  %v608_v41 = vmul.f32 %v2541_v8, %v2505_v3  ;;  %v529_v1 = vmul.f32 %v2535_v24, %v528_v15  ;;  %v592_v15 = vmul.f32 %v2499_v4, %v591_v61  ;;  %v2611_v61 = vmul.f32 %v2530_v59, %v788_v53 }
 0x1c8   :  { %v2550_v26 = vpop.eup %1863  ;;  %v538_v56 = vmul.f32 %v2545_v22, %v2507_v14  ;;  %1873 = vrsqrt.f32 %v2543_v31  ;;  %vm544_vm4 = vweird.f32 %v2545_v22 }
 0x1c9   :  { %3673 = vst [vmem:[#allocation42_spill] sm:$0xff] %v2550_v26  ;;  %v2553_v35 = vpop.eup %1865  ;;  %1875 = vrsqrt.f32 %v2548_v36  ;;  %v2571_v21 = vpop.xlane.xlu0 %439  ;;  %v708_v25 = vmul.f32 %v2550_v26, %v2514_v45  ;;  %v609_v34 = vmul.f32 %v2541_v8, %v608_v41  ;;  %v530_v19 = vmul.f32 0.5, %v529_v1  ;;  %vm2703_vm8 = vmor %vm543_vm3, %vm544_vm4 }
 0x1ca   :  { %v2560_v12 = vpop.eup %1867  ;;  %v548_v55 = vmul.f32 %v2553_v35, %v2517_v10  ;;  %v539_v48 = vmul.f32 %v2545_v22, %v538_v56  ;;  %1877 = vrsqrt.f32 %v2568_v33  ;;  %3678 = vst [vmem:[#allocation45_spill] sm:$0xff] %v2611_v61  ;;  %v2615_v56 = vmax.f32 %v2481_v2, 1e-24 }
 0x1cb   :  { %v598_v46 = vmul.f32 %v2560_v12, %v2522_v16  ;;  %v2585_v43 = vpop.eup %1869  ;;  %v709_v11 = vmul.f32 %v2550_v26, %v708_v25  ;;  %v2625_v13 = vmul.f32 0.5, %v609_v34  ;;  %v596_v2 = vsel %vm2598_vm15, %v2499_v4, %v592_v15 }
 0x1cc   :  { %v2594_v7 = vpop.eup %1871  ;;  %v549_v50 = vmul.f32 %v2553_v35, %v548_v55  ;;  %v540_v53 = vmul.f32 0.5, %v539_v48  ;;  %v618_v55 = vmul.f32 %v2585_v43, %v2533_v27  ;;  %v531_v25 = vsub.f32 1.5, %v530_v19 }
 0x1cd   :  { %v599_v39 = vmul.f32 %v2560_v12, %v598_v46  ;;  %v568_v46 = vmul.f32 %v2594_v7, %v2537_v0  ;;  %v2646_v15 = vmul.f32 0.5, %v709_v11  ;;  %vm554_vm7 = vweird.f32 %v2553_v35 }
 0x1ce   :  { %v550_v48 = vmul.f32 0.5, %v549_v50  ;;  %v2655_v50 = vmax.f32 %v2473_v37, 1e-24  ;;  %v541_v26 = vsub.f32 1.5, %v540_v53  ;;  %v619_v51 = vmul.f32 %v2585_v43, %v618_v55  ;;  %vm2716_vm9 = vmor %vm553_vm5, %vm554_vm7 }
 0x1cf   :  { %3682 = vst [vmem:[#allocation49_spill] sm:$0xff] %v2646_v15  ;;  %v2648_v41 = vmul.f32 0.5, %v599_v39  ;;  %v569_v11 = vmul.f32 %v2594_v7, %v568_v46  ;;  %vm604_vm12 = vweird.f32 %v2560_v12  ;;  %vm574_vm15 = vweird.f32 %v2594_v7 }
 0x1d0   :  { %3683 = vst [vmem:[#allocation50_spill] sm:$0xff] %v2655_v50  ;;  %v551_v37 = vsub.f32 1.5, %v550_v48  ;;  %v542_v61 = vmul.f32 %v2545_v22, %v541_v26  ;;  %vm614_vm3 = vweird.f32 %v2541_v8  ;;  %vm583_vm4 = vweird.f32 %v2543_v31 }
 0x1d1   :  { %v2638_v34 = vpop.xlane.xlu0 %472 }
 0x1d2   :  { %3680 = vst [vmem:[#allocation47_spill] sm:$0xff] %v2638_v34  ;;  %v2658_v34 = vmul.f32 %v596_v2, %v2231_v54  ;;  %v532_v2 = vmul.f32 %v2535_v24, %v531_v25 }
 0x223   :  { %v918_v18 = vpop.xlane.xlu2 %917 }
 0x224   :  { %v2591_v23 = vmax.f32 %v918_v18, 1e-24  ;;  %v2608_v18 = vpop.eup %1873 }
 0x225   :  { %v2618_v45 = vpop.eup %1875  ;;  %v578_v30 = vmul.f32 %v2608_v18, %v2543_v31  ;;  %vm584_vm5 = vweird.f32 %v2608_v18 }
 0x226   :  { %1879 = vrsqrt.f32 %v2591_v23  ;;  %v558_v4 = vmul.f32 %v2618_v45, %v2548_v36  ;;  %v2644_v1 = vpop.eup %1877  ;;  %vm926_vm13 = vweird.f32 %v2591_v23  ;;  %vm564_vm7 = vweird.f32 %v2618_v45 }
 0x227   :  { %1881 = vrsqrt.f32 %v2589_v63  ;;  %3681 = vst [vmem:[#allocation48_spill] sm:$0xff] %v2644_v1  ;;  %v579_v19 = vmul.f32 %v2608_v18, %v578_v30  ;;  %v2675_v55 = vmul.f32 %v2644_v1, %v2568_v33  ;;  %v2697_v33 = vmul.f32 0.5, %v619_v51 }
 0x228   :  { %1883 = vrsqrt.f32 %v2606_v38  ;;  %v559_v53 = vmul.f32 %v2618_v45, %v558_v4  ;;  %v2691_v4 = vmax.f32 %v2509_v44, 1e-24  ;;  %v570_v1 = vmul.f32 0.5, %v569_v11  ;;  %v449_v44 = vpop.xlane.xlu0 %448 }
 0x229   :  { %1885 = vrsqrt.f32 %v2615_v56  ;;  %3684 = vst [vmem:[#allocation51_spill] sm:$0xff] %v2675_v55  ;;  %v580_v55 = vmul.f32 0.5, %v579_v19  ;;  %v2723_v19 = vmax.f32 %v2571_v21, 1e-24  ;;  %v2729_v10 = vmax.f32 %v449_v44, 1e-24 }
 0x22a   :  { %1887 = vrsqrt.f32 %v2623_v57  ;;  %v560_v51 = vmul.f32 0.5, %v559_v53  ;;  %v536_v21 = vsel %vm2685_vm6, %v2535_v24, %v532_v2  ;;  %v571_v53 = vsub.f32 1.5, %v570_v1  ;;  %v443_v1 = vpop.xlane.xlu1 %442 }
 0x22b   :  { %1889 = vrsqrt.f32 %v2691_v4  ;;  %vm563_vm6 = vweird.f32 %v2548_v36 }
 0x22c   :  { %v2651_v59 = vpop.eup %1879  ;;  %v561_v62 = vsub.f32 1.5, %v560_v51  ;;  %1891 = vrsqrt.f32 %v2723_v19  ;;  %v572_v2 = vmul.f32 %v2594_v7, %v571_v53 }
 0x22d   :  { %v921_v39 = vmul.f32 %v2651_v59, %v2591_v23  ;;  %v2665_v57 = vpop.eup %1881  ;;  %vm927_vm10 = vweird.f32 %v2651_v59  ;;  %1893 = vrsqrt.f32 %v2729_v10 }
 0x22e   :  { %v2670_v54 = vpop.eup %1883  ;;  %v718_v26 = vmul.f32 %v2665_v57, %v2589_v63  ;;  %vm928_vm1 = vmor %vm926_vm13, %vm927_vm10  ;;  %vm624_vm10 = vweird.f32 %v2585_v43  ;;  %v562_v48 = vmul.f32 %v2618_v45, %v561_v62 }
 0x22f   :  { %v922_v46 = vmul.f32 %v2651_v59, %v921_v39  ;;  %v2679_v30 = vpop.eup %1885  ;;  %v628_v25 = vmul.f32 %v2670_v54, %v2606_v38  ;;  %vm2774_vm13 = vmor %vm583_vm4, %vm584_vm5 }
 0x230   :  { %v2695_v39 = vpop.eup %1887  ;;  %v638_v11 = vmul.f32 %v2679_v30, %v2615_v56  ;;  %vm644_vm4 = vweird.f32 %v2679_v30 }
 0x231   :  { %3687 = vst [vmem:[#allocation52_spill] sm:$0xff] %v2695_v39  ;;  %v923_v50 = vmul.f32 0.5, %v922_v46  ;;  %v552_v39 = vmul.f32 %v2553_v35, %v551_v37  ;;  %v546_v37 = vsel %vm2703_vm8, %v2545_v22, %v542_v61  ;;  %vm2759_vm8 = vmor %vm573_vm14, %vm574_vm15  ;;  %v629_v31 = vmul.f32 %v2670_v54, %v628_v25 }
 0x232   :  { %v639_v44 = vmul.f32 %v2679_v30, %v638_v11  ;;  %vm2794_vm14 = vmor %vm563_vm6, %vm564_vm7  ;;  %v2806_v25 = vmax.f32 %v2539_v28, 1e-24  ;;  %v576_v14 = vsel %vm2759_vm8, %v2594_v7, %v572_v2  ;;  %v3698_v11 = vsub.f32 1.5, %v2648_v41 }
 0x233   :  { %v924_v46 = vsub.f32 1.5, %v923_v50  ;;  %v581_v50 = vsub.f32 1.5, %v580_v55  ;;  %v556_v22 = vsel %vm2716_vm9, %v2553_v35, %v552_v39  ;;  %v621_v35 = vsub.f32 1.5, %v2697_v33  ;;  %v2766_v55 = vpop.eup %1889  ;;  %vm2829_vm15 = vmor %vm603_vm11, %vm604_vm12 }
 0x234   :  { %vm623_vm9 = vweird.f32 %v2533_v27  ;;  %v849_v33 = vmul.f32 %v556_v22, %v2326_v60  ;;  %v719_v39 = vmul.f32 %v2665_v57, %v718_v26  ;;  %v2803_v26 = vpop.eup %1891  ;;  %v630_v41 = vmul.f32 0.5, %v629_v31  ;;  %vm2852_vm11 = vmor %vm613_vm2, %vm614_vm3 }
 0x235   :  { %v925_v15 = vmul.f32 %v2651_v59, %v924_v46  ;;  %v602_v46 = vmul.f32 %v2560_v12, %v3698_v11  ;;  %v3701_v22 = vsub.f32 1.5, %v2625_v13  ;;  %v851_v61 = vmul.f32 %v576_v14, %v2380_v47  ;;  %vm2875_vm3 = vmor %vm623_vm9, %vm624_vm10 }
 0x236   :  { %vm634_vm12 = vweird.f32 %v2670_v54  ;;  %vm643_vm2 = vweird.f32 %v2615_v56  ;;  %v2889_v27 = vmax.f32 %v2483_v40, 1e-24  ;;  %vm653_vm7 = vweird.f32 %v2691_v4 }
 0x237   :  { %v929_v23 = vsel %vm928_vm1, %v2651_v59, %v925_v15  ;;  %v847_v59 = vmul.f32 %v536_v21, %v2261_v9  ;;  %v582_v15 = vmul.f32 %v2608_v18, %v581_v50  ;;  %vm633_vm1 = vweird.f32 %v2606_v38  ;;  %vm2911_vm6 = vmor %vm643_vm2, %vm644_vm4 }
 0x238   :  { %v2754_v24 = vmul.f32 %v929_v23, %v2456_v52  ;;  %v848_v52 = vmul.f32 %v546_v37, %v2311_v42  ;;  %v2798_v42 = vmax.f32 %v443_v1, 1e-24  ;;  %v2817_v37 = vpop.eup %1893  ;;  %v640_v50 = vmul.f32 0.5, %v639_v44  ;;  %vm2899_vm5 = vmor %vm633_vm1, %vm634_vm12 }
 0x239   :  { %v586_v36 = vsel %vm2774_vm13, %v2608_v18, %v582_v15  ;;  %v566_v18 = vsel %vm2794_vm14, %v2618_v45, %v562_v48  ;;  %v612_v23 = vmul.f32 %v2541_v8, %v3701_v22  ;;  %v648_v45 = vmul.f32 %v2766_v55, %v2691_v4 }
 0x23a   :  { %v2779_v9 = vperm.slane %v2754_v24, 0  ;;  %1895 = vrsqrt.f32 %v2798_v42  ;;  %v852_v16 = vmul.f32 %v586_v36, %v2398_v6  ;;  %v658_v1 = vmul.f32 %v2803_v26, %v2723_v19 }
 0x23b   :  { %1897 = vrsqrt.f32 %v2806_v25  ;;  %v688_v13 = vmul.f32 %v2817_v37, %v2729_v10  ;;  %v2856_v6 = vmul.f32 0.5, %v719_v39  ;;  %v606_v0 = vsel %vm2829_vm15, %v2560_v12, %v602_v46  ;;  %v3733_v12 = vld [vmem:[#allocation50_spill] sm:$0xff] }
 0x23c   :  { %v959_v60 = vmul.f32 %v2779_v9, %v849_v33  ;;  %v958_v62 = vmul.f32 %v2779_v9, %v848_v52  ;;  %v957_v49 = vmul.f32 %v2779_v9, %v847_v59  ;;  %v850_v59 = vmul.f32 %v566_v18, %v2365_v29  ;;  %v476_v18 = vpop.xlane.xlu1 %475 }
 0x23d   :  { %v962_v47 = vmul.f32 %v2779_v9, %v852_v16  ;;  %v961_v2 = vmul.f32 %v2779_v9, %v851_v61  ;;  %v631_v33 = vsub.f32 1.5, %v630_v41  ;;  %v641_v29 = vsub.f32 1.5, %v640_v50 }
 0x23e   :  { %v995_v21 = vsel %vm88_vm0, %v959_v60, 0.0  ;;  %v992_v53 = vsel %vm88_vm0, %v958_v62, 0.0  ;;  %v989_v28 = vsel %vm88_vm0, %v957_v49, 0.0  ;;  %v2864_v52 = vmax.f32 %v2494_v58, 1e-24 }
 0x23f   :  { %996 = vadd.xlane.f32.xlu1 %v995_v21  ;;  %993 = vadd.xlane.f32.xlu0 %v992_v53  ;;  %v960_v3 = vmul.f32 %v2779_v9, %v850_v59  ;;  %v649_v48 = vmul.f32 %v2766_v55, %v648_v45  ;;  %v622_v39 = vmul.f32 %v2585_v43, %v621_v35  ;;  %1899 = vrsqrt.f32 %v2786_v5 }
 0x240   :  { %990 = vadd.xlane.f32.xlu2 %v989_v28  ;;  %v659_v58 = vmul.f32 %v2803_v26, %v658_v1  ;;  %v689_v31 = vmul.f32 %v2817_v37, %v688_v13  ;;  %v616_v44 = vsel %vm2852_vm11, %v2541_v8, %v612_v23  ;;  %v2885_v51 = vpop.eup %1895  ;;  %v1004_v35 = vsel %vm88_vm0, %v962_v47, 0.0 }
 0x241   :  { %v1001_v60 = vsel %vm88_vm0, %v961_v2, 0.0  ;;  %v2893_v62 = vpop.eup %1897  ;;  %1901 = vrsqrt.f32 %v2864_v52  ;;  %v998_v40 = vsel %vm88_vm0, %v960_v3, 0.0  ;;  %v642_v8 = vmul.f32 %v2679_v30, %v641_v29  ;;  %v3713_v29 = vld [vmem:[#allocation38_spill] sm:$0xff] }
 0x242   :  { %v632_v36 = vmul.f32 %v2670_v54, %v631_v33  ;;  %v650_v14 = vmul.f32 0.5, %v649_v48  ;;  %v855_v11 = vmul.f32 %v616_v44, %v2275_v20  ;;  %v854_v46 = vmul.f32 %v606_v0, %v2272_v17  ;;  %v3714_v48 = vld [vmem:[#allocation21_spill] sm:$0xff] }
 0x243   :  { %v626_v21 = vsel %vm2875_vm3, %v2585_v43, %v622_v39  ;;  %v721_v53 = vsub.f32 1.5, %v2856_v6  ;;  %v660_v28 = vmul.f32 0.5, %v659_v58  ;;  %v668_v56 = vmul.f32 %v2885_v51, %v2798_v42  ;;  %v3710_v6 = vld [vmem:[#allocation18_spill] sm:$0xff] }
 0x244   :  { %v690_v7 = vmul.f32 0.5, %v689_v31  ;;  %1903 = vrsqrt.f32 %v2889_v27  ;;  %v678_v41 = vmul.f32 %v2893_v62, %v2806_v25  ;;  %v965_v20 = vmul.f32 %v2779_v9, %v855_v11 }
 0x245   :  { %v964_v17 = vmul.f32 %v2779_v9, %v854_v46  ;;  %v963_v43 = vmul.f32 %v2779_v9, %v2658_v34  ;;  %v646_v50 = vsel %vm2911_vm6, %v2679_v30, %v642_v8  ;;  %v856_v22 = vmul.f32 %v626_v21, %v2296_v32  ;;  %v2937_v45 = vpop.eup %1899  ;;  %v3720_v46 = vld [vmem:[#allocation36_spill] sm:$0xff] }
 0x246   :  { %v636_v23 = vsel %vm2899_vm5, %v2670_v54, %v632_v36  ;;  %v651_v16 = vsub.f32 1.5, %v650_v14  ;;  %vm654_vm8 = vweird.f32 %v2766_v55  ;;  %v2941_v61 = vmax.f32 %v476_v18, 1e-24  ;;  %v3719_v36 = vld [vmem:[#allocation47_spill] sm:$0xff]  ;;  %v3721_v21 = vld [vmem:[#allocation40_spill] sm:$0xff] }
 0x247   :  { %1005 = vadd.xlane.f32.xlu1 %v1004_v35  ;;  %1002 = vadd.xlane.f32.xlu0 %v1001_v60  ;;  %v2943_v34 = vpop.eup %1901  ;;  %v661_v1 = vsub.f32 1.5, %v660_v28  ;;  %vm663_vm9 = vweird.f32 %v2723_v19  ;;  %v669_v32 = vmul.f32 %v2885_v51, %v668_v56  ;;  %v691_v30 = vsub.f32 1.5, %v690_v7  ;;  %vm2964_vm1 = vmor %vm653_vm7, %vm654_vm8  ;;  %v3738_v60 = vld [vmem:[#allocation46_spill] sm:$0xff] }
 0x248   :  { %999 = vadd.xlane.f32.xlu2 %v998_v40  ;;  %vm723_vm10 = vweird.f32 %v2589_v63  ;;  %vm664_vm13 = vweird.f32 %v2803_v26  ;;  %v679_v54 = vmul.f32 %v2893_v62, %v678_v41  ;;  %v1013_v13 = vsel %vm88_vm0, %v965_v20, 0.0  ;;  %v3723_v20 = vld [vmem:[#allocation42_spill] sm:$0xff] }
 0x249   :  { %v1010_v59 = vsel %vm88_vm0, %v964_v17, 0.0  ;;  %vm693_vm14 = vweird.f32 %v2729_v10  ;;  %vm694_vm15 = vweird.f32 %v2817_v37  ;;  %v1007_v15 = vsel %vm88_vm0, %v963_v43, 0.0  ;;  %vm2977_vm11 = vmor %vm663_vm9, %vm664_vm13 }
 0x24a   :  { %v857_v47 = vmul.f32 %v636_v23, %v3710_v6  ;;  %v2956_v2 = vpop.eup %1903  ;;  %v748_v0 = vmul.f32 %v2943_v34, %v2864_v52  ;;  %v2969_v3 = vmax.f32 %v3713_v29, 1e-24  ;;  %1905 = vrsqrt.f32 %v2941_v61  ;;  %vm2988_vm12 = vmor %vm693_vm14, %vm694_vm15  ;;  %v3725_v23 = vld [vmem:[#allocation32_spill] sm:$0xff]  ;;  %v3729_v6 = vld [vmem:[#allocation34_spill] sm:$0xff] }
 0x24b   :  { %v858_v39 = vmul.f32 %v646_v50, %v3714_v48  ;;  %v670_v4 = vmul.f32 0.5, %v669_v32  ;;  %v652_v58 = vmul.f32 %v2766_v55, %v651_v16  ;;  %v662_v31 = vmul.f32 %v2803_v26, %v661_v1  ;;  %v3732_v48 = vld [vmem:[#allocation49_spill] sm:$0xff] }
 0x24c   :  { %v692_v44 = vmul.f32 %v2817_v37, %v691_v30  ;;  %v680_v35 = vmul.f32 0.5, %v679_v54  ;;  %v952_v19 = vrot.slane %v2754_v24, 1  ;;  %v967_v40 = vmul.f32 %v2779_v9, %v857_v47  ;;  %v3728_v54 = vld [vmem:[#allocation25_spill] sm:$0xff] }
 0x24d   :  { %v968_v49 = vmul.f32 %v2779_v9, %v858_v39  ;;  %vm724_vm2 = vweird.f32 %v2665_v57  ;;  %v728_v8 = vmul.f32 %v2937_v45, %v2786_v5  ;;  %v2999_v38 = vmax.f32 %v3719_v36, 1e-24  ;;  %v3740_v36 = vld [vmem:[#allocation43_spill] sm:$0xff] }
 0x24e   :  { %v966_v10 = vmul.f32 %v2779_v9, %v856_v22  ;;  %v738_v14 = vmul.f32 %v2956_v2, %v2889_v27  ;;  %v749_v11 = vmul.f32 %v2943_v34, %v748_v0  ;;  %1907 = vrsqrt.f32 %v2969_v3  ;;  %vm3040_vm14 = vmor %vm723_vm10, %vm724_vm2 }
 0x24f   :  { %1014 = vadd.xlane.f32.xlu1 %v1013_v13  ;;  %1011 = vadd.xlane.f32.xlu0 %v1010_v59  ;;  %v3007_v24 = vmul.f32 %v2665_v57, %v721_v53  ;;  %vm703_vm3 = vweird.f32 %v3720_v46  ;;  %vm704_vm4 = vweird.f32 %v3721_v21  ;;  %v671_v28 = vsub.f32 1.5, %v670_v4  ;;  %v3722_v53 = vld [vmem:[#allocation39_spill] sm:$0xff] }
 0x250   :  { %1008 = vadd.xlane.f32.xlu2 %v1007_v15  ;;  %v656_v56 = vsel %vm2964_vm1, %v2766_v55, %v652_v58  ;;  %v666_v18 = vsel %vm2977_vm11, %v2803_v26, %v662_v31  ;;  %v696_v7 = vsel %vm2988_vm12, %v2817_v37, %v692_v44  ;;  %v3020_v41 = vpop.eup %1905  ;;  %vm713_vm5 = vweird.f32 %v3722_v53  ;;  %v3724_v37 = vld [vmem:[#allocation27_spill] sm:$0xff]  ;;  %v3737_v44 = vld [vmem:[#allocation48_spill] sm:$0xff]  ;;  %vm3109_vm12 = vmor %vm703_vm3, %vm704_vm4 }
 0x251   :  { %vm714_vm6 = vweird.f32 %v3723_v20  ;;  %v681_v17 = vsub.f32 1.5, %v680_v35  ;;  %v3024_v43 = vperm.slane %v952_v19, 0  ;;  %v1022_v50 = vsel %vm88_vm0, %v968_v49, 0.0  ;;  %v3736_v31 = vld [vmem:[#allocation51_spill] sm:$0xff]  ;;  %v3739_v19 = vld [vmem:[#allocation52_spill] sm:$0xff] }
 0x252   :  { %v1019_v55 = vsel %vm88_vm0, %v967_v40, 0.0  ;;  %vm673_vm7 = vweird.f32 %v2798_v42  ;;  %vm674_vm8 = vweird.f32 %v2885_v51  ;;  %1909 = vrsqrt.f32 %v2999_v38  ;;  %vm3122_vm2 = vmor %vm713_vm5, %vm714_vm6 }
 0x253   :  { %v1016_v26 = vsel %vm88_vm0, %v966_v10, 0.0  ;;  %vm683_vm9 = vweird.f32 %v2806_v25  ;;  %vm684_vm13 = vweird.f32 %v2893_v62  ;;  %v860_v22 = vmul.f32 %v666_v18, %v3724_v37  ;;  %vm3057_vm10 = vmor %vm673_vm7, %vm674_vm8 }
 0x254   :  { %v863_v16 = vmul.f32 %v696_v7, %v3725_v23  ;;  %v750_v32 = vmul.f32 0.5, %v749_v11  ;;  %v778_v30 = vmul.f32 %v3020_v41, %v2941_v61  ;;  %v859_v13 = vmul.f32 %v656_v56, %v3728_v54  ;;  %v3048_v15 = vpop.eup %1907  ;;  %vm3071_vm15 = vmor %vm683_vm9, %vm684_vm13 }
 0x255   :  { %v672_v59 = vmul.f32 %v2885_v51, %v671_v28  ;;  %v3051_v47 = vmax.f32 %v3729_v6, 1e-24  ;;  %v970_v0 = vmul.f32 %v2779_v9, %v860_v22  ;;  %v682_v29 = vmul.f32 %v2893_v62, %v681_v17 }
 0x256   :  { %v973_v33 = vmul.f32 %v3024_v43, %v863_v16  ;;  %v711_v39 = vsub.f32 1.5, %v3732_v48  ;;  %1911 = vrsqrt.f32 %v3733_v12  ;;  %v729_v4 = vmul.f32 %v2937_v45, %v728_v8  ;;  %v3751_v48 = vld [vmem:[#allocation35_spill] sm:$0xff] }
 0x257   :  { %1023 = vadd.xlane.f32.xlu1 %v1022_v50  ;;  %1020 = vadd.xlane.f32.xlu0 %v1019_v55  ;;  %v969_v58 = vmul.f32 %v2779_v9, %v859_v13  ;;  %v809_v35 = vmul.f32 %v3737_v44, %v3736_v31  ;;  %v798_v49 = vmul.f32 %v3739_v19, %v3738_v60  ;;  %v3741_v8 = vsub.f32 1.5, %v3740_v36 }
 0x258   :  { %1017 = vadd.xlane.f32.xlu2 %v1016_v26  ;;  %v739_v40 = vmul.f32 %v2956_v2, %v738_v14  ;;  %v3086_v25 = vpop.eup %1909  ;;  %v751_v11 = vsub.f32 1.5, %v750_v32  ;;  %v779_v28 = vmul.f32 %v3020_v41, %v778_v30  ;;  %v676_v56 = vsel %vm3057_vm10, %v2885_v51, %v672_v59  ;;  %v3745_v26 = vld [vmem:[#allocation17_spill] sm:$0xff]  ;;  %v3748_v32 = vld [vmem:[#allocation30_spill] sm:$0xff] }
 0x259   :  { %v3084_v10 = vmul.f32 %v3721_v21, %v3741_v8  ;;  %v726_v18 = vsel %vm3040_vm14, %v2665_v57, %v3007_v24  ;;  %1913 = vrsqrt.f32 %v3051_v47  ;;  %v1028_v14 = vsel %vm88_vm0, %v970_v0, 0.0 }
 0x25a   :  { %v1037_v7 = vsel %vm88_vm0, %v973_v33, 0.0  ;;  %v686_v17 = vsel %vm3071_vm15, %v2893_v62, %v682_v29  ;;  %v730_v50 = vmul.f32 0.5, %v729_v4  ;;  %vm753_vm1 = vweird.f32 %v2864_v52  ;;  %v3744_v62 = vld [vmem:[#allocation28_spill] sm:$0xff] }
 0x25b   :  { %vm754_vm11 = vweird.f32 %v2943_v34  ;;  %v1025_v51 = vsel %vm88_vm0, %v969_v58, 0.0  ;;  %v740_v24 = vmul.f32 0.5, %v739_v40  ;;  %v861_v55 = vmul.f32 %v676_v56, %v3744_v62 }
 0x25c   :  { %v866_v37 = vmul.f32 %v726_v18, %v3745_v26  ;;  %v712_v22 = vmul.f32 %v3723_v20, %v711_v39  ;;  %v3116_v23 = vpop.eup %1911  ;;  %v768_v16 = vmul.f32 %v3086_v25, %v2999_v38  ;;  %v780_v1 = vmul.f32 0.5, %v779_v28  ;;  %vm3135_vm3 = vmor %vm753_vm1, %vm754_vm11  ;;  %v3756_v18 = vld [vmem:[#allocation11_spill] sm:$0xff]  ;;  %v3761_v26 = vld [vmem:[#allocation45_spill] sm:$0xff] }
 0x25d   :  { %v862_v30 = vmul.f32 %v686_v17, %v3748_v32  ;;  %v752_v54 = vmul.f32 %v2943_v34, %v751_v11  ;;  %v799_v13 = vmul.f32 %v3739_v19, %v798_v49  ;;  %v758_v59 = vmul.f32 %v3048_v15, %v2969_v3 }
 0x25e   :  { %v971_v6 = vmul.f32 %v2779_v9, %v861_v55  ;;  %v976_v63 = vmul.f32 %v3024_v43, %v866_v37  ;;  %v3143_v0 = vmul.f32 0.5, %v809_v35  ;;  %vm733_vm4 = vweird.f32 %v2786_v5 }
 0x25f   :  { %1029 = vadd.xlane.f32.xlu0 %v1028_v14  ;;  %1038 = vadd.xlane.f32.xlu1 %v1037_v7  ;;  %vm743_vm5 = vweird.f32 %v2889_v27  ;;  %v972_v33 = vmul.f32 %v2779_v9, %v862_v30  ;;  %v3148_v52 = vpop.eup %1913  ;;  %v731_v29 = vsub.f32 1.5, %v730_v50  ;;  %v3151_v39 = vmax.f32 %v3751_v48, 1e-24  ;;  %v3767_v48 = vld [vmem:[#allocation19_spill] sm:$0xff] }
 0x260   :  { %1026 = vadd.xlane.f32.xlu2 %v1025_v51  ;;  %v706_v4 = vsel %vm3109_vm12, %v3721_v21, %v3084_v10  ;;  %v716_v42 = vsel %vm3122_vm2, %v3723_v20, %v712_v22  ;;  %v741_v58 = vsub.f32 1.5, %v740_v24  ;;  %v769_v31 = vmul.f32 %v3086_v25, %v768_v16  ;;  %v3753_v10 = vld [vmem:[#allocation24_spill] sm:$0xff] }
 0x261   :  { %v781_v35 = vsub.f32 1.5, %v780_v1  ;;  %v756_v9 = vsel %vm3135_vm3, %v2943_v34, %v752_v54  ;;  %vm744_vm6 = vweird.f32 %v2956_v2  ;;  %v759_v49 = vmul.f32 %v3048_v15, %v758_v59  ;;  %v3752_v34 = vld [vmem:[#allocation13_spill] sm:$0xff]  ;;  %v3762_v22 = vld [vmem:[#allocation44_spill] sm:$0xff] }
 0x262   :  { %v1031_v40 = vsel %vm88_vm0, %v971_v6, 0.0  ;;  %v1046_v21 = vsel %vm88_vm0, %v976_v63, 0.0  ;;  %v828_v36 = vmul.f32 %v3148_v52, %v3051_v47  ;;  %vm783_vm7 = vweird.f32 %v2941_v61  ;;  %vm3181_vm13 = vmor %vm743_vm5, %vm744_vm6 }
 0x263   :  { %vm784_vm8 = vweird.f32 %v3020_v41  ;;  %v1034_v20 = vsel %vm88_vm0, %v972_v33, 0.0  ;;  %vm734_vm9 = vweird.f32 %v2937_v45  ;;  %1915 = vrsqrt.f32 %v3151_v39 }
 0x264   :  { %v865_v8 = vmul.f32 %v716_v42, %v3752_v34  ;;  %v869_v11 = vmul.f32 %v756_v9, %v3753_v10  ;;  %v770_v56 = vmul.f32 0.5, %v769_v31  ;;  %v864_v14 = vmul.f32 %v706_v4, %v3756_v18  ;;  %vm3192_vm14 = vmor %vm783_vm7, %vm784_vm8 }
 0x265   :  { %v742_v7 = vmul.f32 %v2956_v2, %v741_v58  ;;  %v782_v17 = vmul.f32 %v3020_v41, %v781_v35  ;;  %v760_v50 = vmul.f32 0.5, %v759_v49  ;;  %v732_v24 = vmul.f32 %v2937_v45, %v731_v29  ;;  %vm3203_vm10 = vmor %vm733_vm4, %vm734_vm9 }
 0x266   :  { %v975_v27 = vmul.f32 %v3024_v43, %v865_v8  ;;  %v979_v57 = vmul.f32 %v3024_v43, %v869_v11  ;;  %v829_v61 = vmul.f32 %v3148_v52, %v828_v36  ;;  %v974_v55 = vmul.f32 %v3024_v43, %v864_v14  ;;  %v3772_v14 = vld [vmem:[#allocation37_spill] sm:$0xff] }
 0x267   :  { %1032 = vadd.xlane.f32.xlu0 %v1031_v40  ;;  %1047 = vadd.xlane.f32.xlu1 %v1046_v21  ;;  %v3210_v37 = vmul.f32 0.5, %v3761_v26  ;;  %vm813_vm15 = vweird.f32 %v3762_v22  ;;  %vm814_vm1 = vweird.f32 %v3737_v44  ;;  %v800_v46 = vmul.f32 0.5, %v799_v13  ;;  %v3788_v21 = vld [vmem:[#allocation23_spill] sm:$0xff] }
 0x268   :  { %1035 = vadd.xlane.f32.xlu2 %v1034_v20  ;;  %v811_v16 = vsub.f32 1.5, %v3143_v0  ;;  %v771_v1 = vsub.f32 1.5, %v770_v56  ;;  %v746_v5 = vsel %vm3181_vm13, %v2956_v2, %v742_v7  ;;  %v786_v32 = vsel %vm3192_vm14, %v3020_v41, %v782_v17  ;;  %v3763_v41 = vld [vmem:[#allocation22_spill] sm:$0xff]  ;;  %v3764_v0 = vld [vmem:[#allocation31_spill] sm:$0xff]  ;;  %vm3239_vm4 = vmor %vm813_vm15, %vm814_vm1 }
 0x269   :  { %v3221_v30 = vpop.eup %1915  ;;  %v761_v54 = vsub.f32 1.5, %v760_v50  ;;  %v1043_v53 = vsel %vm88_vm0, %v975_v27, 0.0  ;;  %v1055_v59 = vsel %vm88_vm0, %v979_v57, 0.0  ;;  %v736_v13 = vsel %vm3203_vm10, %v2937_v45, %v732_v24  ;;  %v3774_v7 = vld [vmem:[#allocation29_spill] sm:$0xff]  ;;  %v3775_v50 = vld [vmem:[#allocation15_spill] sm:$0xff]  ;;  %v3778_v57 = vld [vmem:[#allocation26_spill] sm:$0xff] }
 0x26a   :  { %v830_v6 = vmul.f32 0.5, %v829_v61  ;;  %vm773_vm11 = vweird.f32 %v2999_v38  ;;  %vm774_vm12 = vweird.f32 %v3086_v25  ;;  %v1040_v2 = vsel %vm88_vm0, %v974_v55, 0.0 }
 0x26b   :  { %vm763_vm2 = vweird.f32 %v2969_v3  ;;  %vm764_vm3 = vweird.f32 %v3048_v15  ;;  %v868_v63 = vmul.f32 %v746_v5, %v3763_v41  ;;  %v872_v33 = vmul.f32 %v786_v32, %v3764_v0  ;;  %vm3254_vm5 = vmor %vm773_vm11, %vm774_vm12  ;;  %v3784_v41 = vld [vmem:[#allocation20_spill] sm:$0xff] }
 0x26c   :  { %v838_v29 = vmul.f32 %v3221_v30, %v3151_v39  ;;  %v867_v4 = vmul.f32 %v736_v13, %v3767_v48  ;;  %v772_v42 = vmul.f32 %v3086_v25, %v771_v1  ;;  %v812_v58 = vmul.f32 %v3737_v44, %v811_v16  ;;  %vm3263_vm6 = vmor %vm763_vm2, %vm764_vm3  ;;  %v3785_v0 = vld [vmem:[#allocation12_spill] sm:$0xff] }
 0x26d   :  { %v818_v31 = vmul.f32 %v3116_v23, %v3733_v12  ;;  %v978_v9 = vmul.f32 %v3024_v43, %v868_v63  ;;  %v982_v49 = vmul.f32 %v3024_v43, %v872_v33  ;;  %v762_v40 = vmul.f32 %v3048_v15, %v761_v54  ;;  %v1846_v54 = vld [vmem:[#allocation2] ss:$0 sm:$0xff] }
 0x26e   :  { %v977_v36 = vmul.f32 %v3024_v43, %v867_v4  ;;  %v791_v38 = vsub.f32 1.5, %v3210_v37  ;;  %v801_v20 = vsub.f32 1.5, %v800_v46  ;;  %vm803_vm7 = vweird.f32 %v3738_v60 }
 0x26f   :  { %1044 = vadd.xlane.f32.xlu0 %v1043_v53  ;;  %1056 = vadd.xlane.f32.xlu1 %v1055_v59  ;;  %vm804_vm8 = vweird.f32 %v3739_v19  ;;  %v831_v34 = vsub.f32 1.5, %v830_v6  ;;  %v839_v8 = vmul.f32 %v3221_v30, %v838_v29  ;;  %v776_v3 = vsel %vm3254_vm5, %v3086_v25, %v772_v42  ;;  %v1254_v6 = vpop.xlane.xlu1 %1253 }
 0x270   :  { %1041 = vadd.xlane.f32.xlu2 %v1040_v2  ;;  %v816_v10 = vsel %vm3239_vm4, %v3737_v44, %v812_v58  ;;  %v819_v11 = vmul.f32 %v3116_v23, %v818_v31  ;;  %v1052_v28 = vsel %vm88_vm0, %v978_v9, 0.0  ;;  %v1064_v56 = vsel %vm88_vm0, %v982_v49, 0.0  ;;  %v3773_v44 = vld [vmem:[#allocation41_spill] sm:$0xff]  ;;  %vm3295_vm15 = vmor %vm803_vm7, %vm804_vm8 }
 0x271   :  { %v766_v18 = vsel %vm3263_vm6, %v3048_v15, %v762_v40  ;;  %vm833_vm9 = vweird.f32 %v3051_v47  ;;  %vm834_vm13 = vweird.f32 %v3148_v52  ;;  %v1049_v25 = vsel %vm88_vm0, %v977_v36, 0.0 }
 0x272   :  { %vm793_vm14 = vweird.f32 %v3772_v14  ;;  %vm794_vm10 = vweird.f32 %v3773_v44  ;;  %v871_v17 = vmul.f32 %v776_v3, %v3774_v7  ;;  %v875_v51 = vmul.f32 %v816_v10, %v3775_v50  ;;  %vm3306_vm1 = vmor %vm833_vm9, %vm834_vm13  ;;  %v3790_v7 = vld [vmem:[#allocation10_spill] sm:$0xff] }
 0x273   :  { %v840_v27 = vmul.f32 0.5, %v839_v8  ;;  %v870_v24 = vmul.f32 %v766_v18, %v3778_v57  ;;  %v802_v62 = vmul.f32 %v3739_v19, %v801_v20  ;;  %v832_v61 = vmul.f32 %v3148_v52, %v831_v34  ;;  %vm3315_vm11 = vmor %vm793_vm14, %vm794_vm10 }
 0x274   :  { %v820_v55 = vmul.f32 0.5, %v819_v11  ;;  %v981_v60 = vmul.f32 %v3024_v43, %v871_v17  ;;  %v985_v37 = vmul.f32 %v3024_v43, %v875_v51  ;;  %v792_v22 = vmul.f32 %v3773_v44, %v791_v38  ;;  %v3789_v38 = vld [vmem:[#allocation16_spill] sm:$0xff] }
 0x275   :  { %v980_v16 = vmul.f32 %v3024_v43, %v870_v24  ;;  %v841_v1 = vsub.f32 1.5, %v840_v27  ;;  %v806_v47 = vsel %vm3295_vm15, %v3739_v19, %v802_v62  ;;  %v836_v5 = vsel %vm3306_vm1, %v3148_v52, %v832_v61  ;;  %v3783_v52 = vld [vmem:[#allocation14_spill] sm:$0xff] }
 0x276   :  { %v821_v32 = vsub.f32 1.5, %v820_v55  ;;  %v1061_v53 = vsel %vm88_vm0, %v981_v60, 0.0  ;;  %v1073_v59 = vsel %vm88_vm0, %v985_v37, 0.0  ;;  %v796_v13 = vsel %vm3315_vm11, %v3773_v44, %v792_v22 }
 0x277   :  { %1053 = vadd.xlane.f32.xlu0 %v1052_v28  ;;  %1065 = vadd.xlane.f32.xlu1 %v1064_v56  ;;  %vm843_vm12 = vweird.f32 %v3151_v39  ;;  %vm844_vm2 = vweird.f32 %v3221_v30  ;;  %v1058_v19 = vsel %vm88_vm0, %v980_v16, 0.0  ;;  %vm823_vm3 = vweird.f32 %v3733_v12 }
 0x278   :  { %1050 = vadd.xlane.f32.xlu2 %v1049_v25  ;;  %vm824_vm4 = vweird.f32 %v3116_v23  ;;  %v874_v2 = vmul.f32 %v806_v47, %v3783_v52  ;;  %v877_v63 = vmul.f32 %v836_v5, %v3784_v41  ;;  %v873_v33 = vmul.f32 %v796_v13, %v3785_v0  ;;  %vm3340_vm5 = vmor %vm843_vm12, %vm844_vm2 }
 0x279   :  { %v842_v39 = vmul.f32 %v3221_v30, %v841_v1  ;;  %v1259_v29 = vadd.f32 %v1846_v54, %v1254_v6  ;;  %v822_v4 = vmul.f32 %v3116_v23, %v821_v32  ;;  %vm825_vm6 = vmor %vm823_vm3, %vm824_vm4  ;;  %v1119_v17 = vadd.s32 4294967288, %v3790_v7 }
 0x27a   :  { %v984_v48 = vmul.f32 %v3024_v43, %v874_v2  ;;  %v987_v12 = vmul.f32 %v3024_v43, %v877_v63  ;;  %v983_v42 = vmul.f32 %v3024_v43, %v873_v33  ;;  %vm1643_vm14 = vcmask 1024  }
 0x27b   :  { %v846_v58 = vsel %vm3340_vm5, %v3221_v30, %v842_v39  ;;  %v1718_v31 = vmul.f32 -1.442695, %v1259_v29  ;;  %v826_v49 = vsel %vm825_vm6, %v3116_v23, %v822_v4  ;;  %v1127_v2 = vadd.s32 4294967272, %v3790_v7 }
 0x27c   :  { %v1070_v35 = vsel %vm88_vm0, %v984_v48, 0.0  ;;  %v1079_v9 = vsel %vm88_vm0, %v987_v12, 0.0  ;;  %v1067_v40 = vsel %vm88_vm0, %v983_v42, 0.0  ;;  %v878_v36 = vmul.f32 %v846_v58, %v3788_v21  ;;  %v3791_v21 = vld [vmem:[#allocation9_spill] sm:$0xff] }
 0x27d   :  { %v876_v20 = vmul.f32 %v826_v49, %v3789_v38  ;;  %1917 = vpow2.f32 %v1718_v31  ;;  %v1131_v33 = vadd.s32 4294967264, %v3790_v7  ;;  %vm1125_vm10 = vcmask 195712  }
 0x27e   :  { %v988_v34 = vmul.f32 %v3024_v43, %v878_v36  ;;  %vm1129_vm15 = vcmask 261312   ;;  %v1139_v58 = vadd.s32 4294967248, %v3790_v7  ;;  %vm1133_vm1 = vcmask 326912  }
 0x27f   :  { %1062 = vadd.xlane.f32.xlu0 %v1061_v53  ;;  %1074 = vadd.xlane.f32.xlu1 %v1073_v59  ;;  %v986_v30 = vmul.f32 %v3024_v43, %v876_v20  ;;  %v3397_v36 = vadd.s32 120, %v3791_v21  ;;  %v3400_v38 = vadd.s32 112, %v3791_v21  ;;  %v3403_v20 = vadd.s32 104, %v3791_v21 }
 0x280   :  { %1059 = vadd.xlane.f32.xlu2 %v1058_v19  ;;  %v1082_v8 = vsel %vm88_vm0, %v988_v34, 0.0  ;;  %v1123_v19 = vadd.s32 4294967280, %v3790_v7  ;;  %v1143_v34 = vadd.s32 4294967240, %v3790_v7  ;;  %vm1137_vm11 = vcmask 392512  }
 0x281   :  { %v1076_v3 = vsel %vm88_vm0, %v986_v30, 0.0  ;;  %vm1121_vm0 = vcmask 130112   ;;  %1810 = vset.pattern.permute.xlu0 %v3397_v36  ;;  %1811 = vset.pattern.permute.xlu1 %v3400_v38  ;;  %vm1141_vm12 = vcmask 458112   ;;  %vm1145_vm2 = vcmask 523712  }
 0x282   :  { %1812 = vset.pattern.permute.xlu2 %v3403_v20  ;;  %vm1149_vm3 = vcmask 589312   ;;  %vm1153_vm4 = vcmask 654912   ;;  %vm1157_vm5 = vcmask 720512   ;;  %vm1161_vm6 = vcmask 786112  }
 0x283   :  { %v1918_v23 = vpop.eup %1917 }
 0x284   :  { %v1263_v10 = vadd.f32 1.0, %v1918_v23 }
 0x286   :  { %1919 = vrcp.f32 %v1263_v10  ;;  %vm1269_vm7 = vweird.f32 %v1263_v10  ;;  %v1275_v25 = vand.u32 2147483648, %v1263_v10  ;;  %v1273_v44 = vand.u32 2147483647, %v1263_v10 }
 0x287   :  { %1071 = vadd.xlane.f32.xlu0 %v1070_v35  ;;  %1080 = vadd.xlane.f32.xlu1 %v1079_v9  ;;  %v1135_v35 = vadd.s32 4294967256, %v3790_v7 }
 0x288   :  { %1068 = vadd.xlane.f32.xlu2 %v1067_v40  ;;  %v1276_v43 = vor.u32 1.1754944e-38, %v1275_v25  ;;  %vm1274_vm13 = vcmp.eq.f32.partialorder %v1273_v44, 8.507059e+37 }
 0x28c   :  { %v1920_v11 = vpop.eup %1919 }
 0x28d   :  { %v1265_v28 = vmul.f32 %v1920_v11, %v1263_v10  ;;  %vm1270_vm8 = vweird.f32 %v1920_v11 }
 0x28e   :  { %vm1271_vm9 = vmor %vm1269_vm7, %vm1270_vm8  ;;  %vm1165_vm7 = vcmask 851712   ;;  %vm1169_vm8 = vcmask 917312  }
 0x28f   :  { %1083 = vadd.xlane.f32.xlu0 %v1082_v8  ;;  %v1266_v56 = vsub.f32 1.0, %v1265_v28 }
 0x290   :  { %1077 = vadd.xlane.f32.xlu2 %v1076_v3 }
 0x291   :  { %v1267_v18 = vmul.f32 %v1920_v11, %v1266_v56 }
 0x293   :  { %v1268_v14 = vadd.f32 %v1920_v11, %v1267_v18 }
 0x295   :  { %v1272_v50 = vsel %vm1271_vm9, %v1920_v11, %v1268_v14  ;;  %v1151_v14 = vadd.s32 4294967224, %v3790_v7  ;;  %vm1173_vm9 = vcmask 982912  }
 0x296   :  { %v3362_v24 = vsel %vm1274_vm13, %v1276_v43, %v1272_v50  ;;  %v1147_v43 = vadd.s32 4294967232, %v3790_v7  ;;  %vm1177_vm13 = vcmask 1048512  }
 0x297   :  { %1644 = vst.msk [vmem:[%s3590_s13] sm:$0x3] %vm1643_vm14, %v3362_v24 }
 0x2b2   :  { %v997_v51 = vpop.xlane.xlu1 %996  ;;  %v994_v15 = vpop.xlane.xlu0 %993 }
 0x2b3   :  { %v991_v27 = vpop.xlane.xlu2 %990  ;;  %v1120_v57 = vperm.slane %v994_v15, %v1119_v17  ;;  %v1124_v0 = vperm.slane %v997_v51, %v1123_v19 }
 0x2b4   :  { %v1118_v62 = vperm.slane %v991_v27, %v3790_v7  ;;  %v1155_v27 = vadd.s32 4294967216, %v3790_v7 }
 0x2b6   :  { %v1122_v61 = vsel %vm1121_vm0, %v1120_v57, %v1118_v62 }
 0x2b7   :  { %v1126_v4 = vsel %vm1125_vm10, %v1124_v0, %v1122_v61 }
 0x2ba   :  { %v1006_v55 = vpop.xlane.xlu1 %1005  ;;  %v1003_v26 = vpop.xlane.xlu0 %1002 }
 0x2bb   :  { %v1000_v60 = vpop.xlane.xlu2 %999  ;;  %v1132_v42 = vperm.slane %v1003_v26, %v1131_v33  ;;  %v1136_v10 = vperm.slane %v1006_v55, %v1135_v35 }
 0x2bc   :  { %v1128_v45 = vperm.slane %v1000_v60, %v1127_v2 }
 0x2be   :  { %v1130_v9 = vsel %vm1129_vm15, %v1128_v45, %v1126_v4 }
 0x2bf   :  { %v1134_v3 = vsel %vm1133_vm1, %v1132_v42, %v1130_v9 }
 0x2c0   :  { %v1138_v18 = vsel %vm1137_vm11, %v1136_v10, %v1134_v3  ;;  %v1921_v10 = vld [vmem:[%s3579_s2] sm:$0x3] }
 0x2c1   :  { %vm1085_vm14 = vcmp.gt.f32.partialorder %v1921_v10, 0.0 }
 0x2c2   :  { %v3370_v37 = vpop.xlane.xlu1 %1014  ;;  %v3372_v22 = vpop.xlane.xlu0 %1011 }
 0x2c3   :  { %v1009_v46 = vpop.xlane.xlu2 %1008  ;;  %v1144_v25 = vperm.slane %v3372_v22, %v1143_v34  ;;  %v1148_v55 = vperm.slane %v3370_v37, %v1147_v43  ;;  %v1167_v37 = vadd.s32 4294967192, %v3790_v7 }
 0x2c4   :  { %v1140_v23 = vperm.slane %v1009_v46, %v1139_v58 }
 0x2ca   :  { %v3374_v16 = vpop.xlane.xlu1 %1023  ;;  %v3376_v1 = vpop.xlane.xlu0 %1020 }
 0x2cb   :  { %v3378_v47 = vpop.xlane.xlu2 %1017 }
 0x2cc   :  { %v1152_v61 = vperm.slane %v3378_v47, %v1151_v14 }
 0x2d2   :  { %v1039_v5 = vpop.xlane.xlu1 %1038  ;;  %v3380_v32 = vpop.xlane.xlu0 %1029 }
 0x2d3   :  { %v3382_v54 = vpop.xlane.xlu2 %1026  ;;  %v1179_v39 = vperm.slane %v1039_v5, %v3790_v7  ;;  %v1168_v42 = vperm.slane %v3380_v32, %v1167_v37 }
 0x2da   :  { %v1048_v53 = vpop.xlane.xlu1 %1047  ;;  %v3384_v59 = vpop.xlane.xlu0 %1032 }
 0x2db   :  { %v3386_v13 = vpop.xlane.xlu2 %1035  ;;  %v1184_v30 = vperm.slane %v1048_v53, %v1127_v2  ;;  %v1156_v53 = vperm.slane %v3376_v1, %v1155_v27  ;;  %v1171_v1 = vadd.s32 4294967184, %v3790_v7 }
 0x2e2   :  { %v1045_v6 = vpop.xlane.xlu0 %1044  ;;  %v1057_v41 = vpop.xlane.xlu1 %1056 }
 0x2e3   :  { %v1042_v52 = vpop.xlane.xlu2 %1041  ;;  %v1182_v29 = vperm.slane %v1045_v6, %v1123_v19  ;;  %v1190_v57 = vperm.slane %v1057_v41, %v1139_v58  ;;  %v1163_v6 = vadd.s32 4294967200, %v3790_v7  ;;  %v1159_v19 = vadd.s32 4294967208, %v3790_v7 }
 0x2e4   :  { %v1180_v63 = vperm.slane %v1042_v52, %v1119_v17  ;;  %v1142_v17 = vsel %vm1141_vm12, %v1140_v23, %v1138_v18  ;;  %v1175_v58 = vadd.s32 4294967176, %v3790_v7 }
 0x2e5   :  { %v1146_v62 = vsel %vm1145_vm2, %v1144_v25, %v1142_v17  ;;  %v1160_v45 = vperm.slane %v3374_v16, %v1159_v19  ;;  %v1338_v17 = vadd.s32 64, %v3791_v21 }
 0x2e6   :  { %v1181_v48 = vsel %vm1121_vm0, %v1180_v63, %v1179_v39  ;;  %v1150_v5 = vsel %vm1149_vm3, %v1148_v55, %v1146_v62  ;;  %v1164_v39 = vperm.slane %v3382_v54, %v1163_v6  ;;  %v1172_v54 = vperm.slane %v3384_v59, %v1171_v1 }
 0x2e7   :  { %v1183_v49 = vsel %vm1125_vm10, %v1182_v29, %v1181_v48  ;;  %v1154_v52 = vsel %vm1153_vm4, %v1152_v61, %v1150_v5  ;;  %vm1210_vm0 = vcmask 1041409   ;;  %v1975_v55 = vmov 1.0  }
 0x2e8   :  { %v1185_v11 = vsel %vm1129_vm15, %v1184_v30, %v1183_v49  ;;  %v1176_v30 = vperm.slane %v3386_v13, %v1175_v58 }
 0x2ea   :  { %v1054_v12 = vpop.xlane.xlu0 %1053  ;;  %v1066_v8 = vpop.xlane.xlu1 %1065 }
 0x2eb   :  { %v1051_v31 = vpop.xlane.xlu2 %1050  ;;  %v1188_v28 = vperm.slane %v1054_v12, %v1135_v35  ;;  %v1196_v63 = vperm.slane %v1066_v8, %v1151_v14  ;;  %v1362_v14 = vadd.s32 96, %v3791_v21 }
 0x2ec   :  { %v1186_v40 = vperm.slane %v1051_v31, %v1131_v33  ;;  %v1158_v33 = vsel %vm1157_vm5, %v1156_v53, %v1154_v52 }
 0x2ed   :  { %v1162_v4 = vsel %vm1161_vm6, %v1160_v45, %v1158_v33 }
 0x2ee   :  { %v1187_v56 = vsel %vm1133_vm1, %v1186_v40, %v1185_v11  ;;  %v1166_v31 = vsel %vm1165_vm7, %v1164_v39, %v1162_v4 }
 0x2ef   :  { %v1189_v51 = vsel %vm1137_vm11, %v1188_v28, %v1187_v56 }
 0x2f0   :  { %v1191_v26 = vsel %vm1141_vm12, %v1190_v57, %v1189_v51  ;;  %v1326_v51 = vadd.s32 48, %v3791_v21 }
 0x2f2   :  { %v1063_v44 = vpop.xlane.xlu0 %1062  ;;  %v1075_v46 = vpop.xlane.xlu1 %1074 }
 0x2f3   :  { %v1060_v50 = vpop.xlane.xlu2 %1059  ;;  %v1194_v60 = vperm.slane %v1063_v44, %v1147_v43  ;;  %v1202_v9 = vperm.slane %v1075_v46, %v1163_v6  ;;  %v1356_v43 = vadd.s32 88, %v3791_v21  ;;  %v1302_v6 = vadd.s32 16, %v3791_v21 }
 0x2f4   :  { %v1192_v15 = vperm.slane %v1060_v50, %v1143_v34  ;;  %v1170_v34 = vsel %vm1169_vm8, %v1168_v42, %v1166_v31  ;;  %v1332_v50 = vadd.s32 56, %v3791_v21  ;;  %v3792_v31 = vld [vmem:[#allocation33_spill] sm:$0xff] }
 0x2f5   :  { %v1174_v32 = vsel %vm1173_vm9, %v1172_v54, %v1170_v34 }
 0x2f6   :  { %v1193_v22 = vsel %vm1145_vm2, %v1192_v15, %v1191_v26  ;;  %v1178_v28 = vsel %vm1177_vm13, %v1176_v30, %v1174_v32 }
 0x2f7   :  { %v1195_v47 = vsel %vm1149_vm3, %v1194_v60, %v1193_v22  ;;  %v1308_v22 = vadd.s32 24, %v3791_v21 }
 0x2f8   :  { %v1197_v29 = vsel %vm1153_vm4, %v1196_v63, %v1195_v47  ;;  %v1279_v47 = vmul.f32 0.5, %v3362_v24 }
 0x2fa   :  { %v1072_v2 = vpop.xlane.xlu0 %1071  ;;  %v1081_v35 = vpop.xlane.xlu1 %1080 }
 0x2fb   :  { %v1069_v41 = vpop.xlane.xlu2 %1068  ;;  %v1200_v48 = vperm.slane %v1072_v2, %v1159_v19  ;;  %v1206_v7 = vperm.slane %v1081_v35, %v1171_v1  ;;  %v1296_v2 = vadd.s32 8, %v3791_v21 }
 0x2fc   :  { %v1198_v0 = vperm.slane %v1069_v41, %v1155_v27  ;;  %v1320_v27 = vadd.s32 40, %v3791_v21  ;;  %v1976_v41 = vmov 0  }
 0x2fe   :  { %v1199_v12 = vsel %vm1157_vm5, %v1198_v0, %v1197_v29  ;;  %v1280_v0 = vadd.f32 1.0, %v1279_v47 }
 0x2ff   :  { %v1201_v16 = vsel %vm1161_vm6, %v1200_v48, %v1199_v12 }
 0x300   :  { %v1203_v3 = vsel %vm1165_vm7, %v1202_v9, %v1201_v16  ;;  %v1281_v33 = vmul.f32 16.0, %v1280_v0 }
 0x302   :  { %v1084_v40 = vpop.xlane.xlu0 %1083  ;;  %v1799_v24 = vcvt.f32.s32 %v1281_v33  ;;  %v1802_v29 = vand.u32 2147483648, %v1281_v33  ;;  %v1797_v48 = vand.u32 2147483647, %v1281_v33 }
 0x303   :  { %v1078_v49 = vpop.xlane.xlu2 %1077  ;;  %v1208_v59 = vperm.slane %v1084_v40, %v1175_v58 }
 0x304   :  { %v1204_v8 = vperm.slane %v1078_v49, %v1167_v37  ;;  %v1800_v1 = vcvt.s32.f32 %v1799_v24 }
 0x306   :  { %v1205_v23 = vsel %vm1169_vm8, %v1204_v8, %v1203_v3  ;;  %v1801_v45 = vand.u32 2147483647, %v1800_v1 }
 0x307   :  { %v1207_v11 = vsel %vm1173_vm9, %v1206_v7, %v1205_v23  ;;  %vm1798_vm9 = vcmp.lt.f32.partialorder %v1797_v48, 8388608.0 }
 0x308   :  { %v1209_v56 = vsel %vm1177_vm13, %v1208_v59, %v1207_v11  ;;  %v1803_v12 = vor.u32 %v1802_v29, %v1801_v45 }
 0x309   :  { %v1211_v13 = vsel %vm1210_vm0, %v1209_v56, %v1178_v28 }
 0x30a   :  { %v1213_v18 = vsel %vm1085_vm14, %v1211_v13, -inf  ;;  %v1804_v58 = vsel %vm1798_vm9, %v1803_v12, %v1281_v33 }
 0x30b   :  { %v3445_v25 = vperm.slane %v1213_v18, 0  ;;  %1636 = vst [vmem:[#allocation3] sm:$0x3] %v1213_v18  ;;  %v3453_v44 = vperm.slane %v1213_v18, 1  ;;  %v1482_v57 = vrot.slane %v1213_v18, 1  ;;  %v1286_v54 = vmin.f32 %v1804_v58, %v3792_v31 }
 0x30c   :  { %1655 = dma.vmem_to_hbm [thread:$0]  %s1651_s3, 32, %s1653_s25, [#allocation4]  }
 0x30d   :  { %1370 = vperm.xlu2 %1812, %v3445_v25   ;;  %1376 = vperm.xlu1 %1811, %v3445_v25   ;;  %v3483_v62 = vperm.slane %v1482_v57, 0 }
 0x30e   :  { %1382 = vperm.xlu0 %1810, %v3445_v25  }
 0x315   :  { %1813 = vset.pattern.permute.xlu2 %v3397_v36  ;;  %1814 = vset.pattern.permute.xlu1 %v1362_v14  ;;  %v1350_v36 = vadd.s32 80, %v3791_v21 }
 0x316   :  { %1817 = vset.pattern.permute.xlu0 %v3403_v20  ;;  %v1314_v20 = vadd.s32 32, %v3791_v21 }
 0x31d   :  { %1479 = vperm.xlu2 %1813, %v3453_v44   ;;  %1364 = vperm.xlu1 %1814, %v3445_v25  }
 0x31e   :  { %1467 = vperm.xlu0 %1817, %v3453_v44  }
 0x325   :  { %1815 = vset.pattern.permute.xlu2 %v3400_v38  ;;  %1816 = vset.pattern.permute.xlu1 %v1356_v43  ;;  %v1344_v38 = vadd.s32 72, %v3791_v21 }
 0x326   :  { %1822 = vset.pattern.permute.xlu0 %v1338_v17 }
 0x32d   :  { %1473 = vperm.xlu2 %1815, %v3453_v44   ;;  %1358 = vperm.xlu1 %1816, %v3445_v25  }
 0x32e   :  { %1340 = vperm.xlu0 %1822, %v3445_v25  }
 0x335   :  { %1818 = vset.pattern.permute.xlu2 %v1350_v36  ;;  %1819 = vset.pattern.permute.xlu1 %v1362_v14 }
 0x336   :  { %1437 = vperm.xlu0 %1822, %v3453_v44  }
 0x33d   :  { %1352 = vperm.xlu2 %1818, %v3445_v25   ;;  %1461 = vperm.xlu1 %1819, %v3453_v44  }
 0x33e   :  { %1829 = vset.pattern.permute.xlu0 %v1314_v20 }
 0x345   :  { %1820 = vset.pattern.permute.xlu2 %v1344_v38  ;;  %1821 = vset.pattern.permute.xlu1 %v1356_v43 }
 0x346   :  { %1316 = vperm.xlu0 %1829, %v3445_v25  }
 0x34d   :  { %1346 = vperm.xlu2 %1820, %v3445_v25   ;;  %1455 = vperm.xlu1 %1821, %v3453_v44  }
 0x34e   :  { %1413 = vperm.xlu0 %1829, %v3453_v44  }
 0x355   :  { %1823 = vset.pattern.permute.xlu2 %v1350_v36  ;;  %1824 = vset.pattern.permute.xlu1 %v1332_v50 }
 0x356   :  { %1836 = vset.pattern.permute.xlu0 %v3791_v21 }
 0x35d   :  { %1449 = vperm.xlu2 %1823, %v3453_v44   ;;  %1334 = vperm.xlu1 %1824, %v3445_v25  }
 0x35e   :  { %1292 = vperm.xlu0 %1836, %v3445_v25  }
 0x365   :  { %1825 = vset.pattern.permute.xlu2 %v1344_v38  ;;  %1826 = vset.pattern.permute.xlu1 %v1326_v51 }
 0x366   :  { %1841 = vset.pattern.permute.xlu0 %v1976_v41 }
 0x367   :  { %v1371_v15 = vpop.permute.xlu2 %1370 }
 0x368   :  { %vm1500_vm11 = vcmp.gt.f32.partialorder %v1371_v15, %v3445_v25 }
 0x36d   :  { %1443 = vperm.xlu2 %1825, %v3453_v44   ;;  %1328 = vperm.xlu1 %1826, %v3445_v25  }
 0x375   :  { %1827 = vset.pattern.permute.xlu2 %v1320_v27  ;;  %1828 = vset.pattern.permute.xlu1 %v1332_v50 }
 0x377   :  { %v1480_v61 = vpop.permute.xlu2 %1479 }
 0x378   :  { %vm1518_vm10 = vcmp.gt.f32.partialorder %v1480_v61, %v3483_v62 }
 0x379   :  { %1767 = vmatpush.msk.msra.mxu0 %vm1518_vm10, %v1975_v55 }
 0x37d   :  { %1322 = vperm.xlu2 %1827, %v3445_v25   ;;  %1431 = vperm.xlu1 %1828, %v3453_v44  }
 0x37f   :  { %v1377_v26 = vpop.permute.xlu1 %1376 }
 0x380   :  { %v1383_v60 = vpop.permute.xlu0 %1382  ;;  %vm1501_vm1 = vcmp.gt.f32.partialorder %v1377_v26, %v3445_v25 }
 0x381   :  { %vm1502_vm15 = vcmp.gt.f32.partialorder %v1383_v60, %v3445_v25 }
 0x382   :  { %1751 = vmatpush.msk.msra.mxu3 %vm1502_vm15, %v1975_v55 }
 0x384   :  { %1752 = vmatpush.msk.msra.mxu3 %vm1501_vm1, %v1975_v55 }
 0x385   :  { %1830 = vset.pattern.permute.xlu2 %v1326_v51  ;;  %1831 = vset.pattern.permute.xlu1 %v1308_v22 }
 0x386   :  { %1753 = vmatpush.msk.msra.mxu3 %vm1500_vm11, %v1975_v55 }
 0x387   :  { %v1474_v46 = vpop.permute.xlu2 %1473 }
 0x388   :  { %vm1517_vm12 = vcmp.gt.f32.partialorder %v1474_v46, %v3483_v62 }
 0x389   :  { %1768 = vmatpush.msk.msra.mxu0 %vm1517_vm12, %v1975_v55 }
 0x38d   :  { %1425 = vperm.xlu2 %1830, %v3453_v44   ;;  %1310 = vperm.xlu1 %1831, %v3445_v25  }
 0x38f   :  { %v1365_v5 = vpop.permute.xlu1 %1364 }
 0x390   :  { %vm1499_vm2 = vcmp.gt.f32.partialorder %v1365_v5, %v3445_v25  ;;  %v1468_v53 = vpop.permute.xlu0 %1467 }
 0x391   :  { %vm1516_vm3 = vcmp.gt.f32.partialorder %v1468_v53, %v3483_v62  ;;  %1754 = vmatpush.msk.msra.mxu3 %vm1499_vm2, %v1975_v55 }
 0x392   :  { %1769 = vmatpush.msk.msra.mxu0 %vm1516_vm3, %v1975_v55 }
 0x395   :  { %1832 = vset.pattern.permute.xlu2 %v1320_v27  ;;  %1833 = vset.pattern.permute.xlu1 %v1302_v6 }
 0x397   :  { %v1353_v19 = vpop.permute.xlu2 %1352 }
 0x398   :  { %vm1497_vm5 = vcmp.gt.f32.partialorder %v1353_v19, %v3445_v25 }
 0x39d   :  { %1419 = vperm.xlu2 %1832, %v3453_v44   ;;  %1304 = vperm.xlu1 %1833, %v3445_v25  }
 0x39f   :  { %v1359_v52 = vpop.permute.xlu1 %1358 }
 0x3a0   :  { %vm1498_vm4 = vcmp.gt.f32.partialorder %v1359_v52, %v3445_v25  ;;  %v1341_v37 = vpop.permute.xlu0 %1340 }
 0x3a1   :  { %1755 = vmatpush.msk.msra.mxu3 %vm1498_vm4, %v1975_v55  ;;  %vm1495_vm7 = vcmp.gt.f32.partialorder %v1341_v37, %v3445_v25 }
 0x3a3   :  { %1756 = vmatpush.msk.msra.mxu3 %vm1497_vm5, %v1975_v55 }
 0x3a5   :  { %1834 = vset.pattern.permute.xlu2 %v1296_v2  ;;  %1835 = vset.pattern.permute.xlu1 %v1308_v22 }
 0x3a7   :  { %v1347_v63 = vpop.permute.xlu2 %1346 }
 0x3a8   :  { %vm1496_vm6 = vcmp.gt.f32.partialorder %v1347_v63, %v3445_v25  ;;  %v1438_v35 = vpop.permute.xlu0 %1437 }
 0x3a9   :  { %1757 = vmatpush.msk.msra.mxu3 %vm1496_vm6, %v1975_v55  ;;  %vm1511_vm15 = vcmp.gt.f32.partialorder %v1438_v35, %v3483_v62 }
 0x3ab   :  { %1758 = vmatpush.msk.msra.mxu3 %vm1495_vm7, %v1975_v55 }
 0x3ad   :  { %1298 = vperm.xlu2 %1834, %v3445_v25   ;;  %1407 = vperm.xlu1 %1835, %v3453_v44  }
 0x3af   :  { %v1462_v39 = vpop.permute.xlu1 %1461 }
 0x3b0   :  { %vm1515_vm8 = vcmp.gt.f32.partialorder %v1462_v39, %v3483_v62 }
 0x3b1   :  { %1770 = vmatpush.msk.msra.mxu0 %vm1515_vm8, %v1975_v55 }
 0x3b5   :  { %1837 = vset.pattern.permute.xlu2 %v1302_v6  ;;  %1838 = vset.pattern.permute.xlu1 %v1296_v2 }
 0x3b7   :  { %v1450_v4 = vpop.permute.xlu2 %1449 }
 0x3b8   :  { %vm1513_vm14 = vcmp.gt.f32.partialorder %v1450_v4, %v3483_v62  ;;  %v1317_v40 = vpop.permute.xlu0 %1316 }
 0x3b9   :  { %vm1491_vm2 = vcmp.gt.f32.partialorder %v1317_v40, %v3445_v25 }
 0x3bd   :  { %1401 = vperm.xlu2 %1837, %v3453_v44   ;;  %1395 = vperm.xlu1 %1838, %v3453_v44  }
 0x3bf   :  { %v1456_v42 = vpop.permute.xlu1 %1455 }
 0x3c0   :  { %vm1514_vm13 = vcmp.gt.f32.partialorder %v1456_v42, %v3483_v62  ;;  %v1414_v8 = vpop.permute.xlu0 %1413 }
 0x3c1   :  { %1771 = vmatpush.msk.msra.mxu0 %vm1514_vm13, %v1975_v55  ;;  %vm1507_vm6 = vcmp.gt.f32.partialorder %v1414_v8, %v3483_v62 }
 0x3c3   :  { %1772 = vmatpush.msk.msra.mxu0 %vm1513_vm14, %v1975_v55 }
 0x3c5   :  { %1839 = vset.pattern.permute.xlu2 %v3791_v21  ;;  %1840 = vset.pattern.permute.xlu1 %v1976_v41 }
 0x3c6   :  { %1625 = vperm.xlu1 %1840, %v1286_v54  }
 0x3c7   :  { %v1444_v16 = vpop.permute.xlu2 %1443 }
 0x3c8   :  { %vm1512_vm10 = vcmp.gt.f32.partialorder %v1444_v16, %v3483_v62 }
 0x3c9   :  { %1773 = vmatpush.msk.msra.mxu0 %vm1512_vm10, %v1975_v55 }
 0x3cb   :  { %1774 = vmatpush.msk.msra.mxu0 %vm1511_vm15, %v1975_v55 }
 0x3cd   :  { %1389 = vperm.xlu2 %1839, %v3453_v44   ;;  %v3793_v44 = vmov 0.0  }
 0x3cf   :  { %v1335_v9 = vpop.permute.xlu1 %1334 }
 0x3d0   :  { %vm1494_vm1 = vcmp.gt.f32.partialorder %v1335_v9, %v3445_v25  ;;  %v1293_v59 = vpop.permute.xlu0 %1292 }
 0x3d1   :  { %1759 = vmatpush.msk.msra.mxu3 %vm1494_vm1, %v1975_v55  ;;  %vm1487_vm13 = vcmp.gt.f32.partialorder %v1293_v59, %v3445_v25 }
 0x3d7   :  { %v1323_v21 = vpop.permute.xlu2 %1322 }
 0x3d8   :  { %vm1492_vm12 = vcmp.gt.f32.partialorder %v1323_v21, %v3445_v25 }
 0x3df   :  { %v1329_v49 = vpop.permute.xlu1 %1328 }
 0x3e0   :  { %vm1493_vm11 = vcmp.gt.f32.partialorder %v1329_v49, %v3445_v25 }
 0x3e1   :  { %1760 = vmatpush.msk.msra.mxu3 %vm1493_vm11, %v1975_v55 }
 0x3e3   :  { %1761 = vmatpush.msk.msra.mxu3 %vm1492_vm12, %v1975_v55 }
 0x3e5   :  { %1762 = vmatpush.msk.msra.mxu3 %vm1491_vm2, %v1975_v55 }
 0x3e7   :  { %v1426_v34 = vpop.permute.xlu2 %1425 }
 0x3e8   :  { %vm1509_vm4 = vcmp.gt.f32.partialorder %v1426_v34, %v3483_v62 }
 0x3ef   :  { %v1432_v30 = vpop.permute.xlu1 %1431 }
 0x3f0   :  { %vm1510_vm3 = vcmp.gt.f32.partialorder %v1432_v30, %v3483_v62 }
 0x3f1   :  { %1775 = vmatpush.msk.msra.mxu0 %vm1510_vm3, %v1975_v55 }
 0x3f3   :  { %1776 = vmatpush.msk.msra.mxu0 %vm1509_vm4, %v1975_v55 }
 0x3f7   :  { %v1420_v32 = vpop.permute.xlu2 %1419 }
 0x3f8   :  { %vm1508_vm5 = vcmp.gt.f32.partialorder %v1420_v32, %v3483_v62 }
 0x3f9   :  { %1777 = vmatpush.msk.msra.mxu0 %vm1508_vm5, %v1975_v55 }
 0x3fb   :  { %1778 = vmatpush.msk.msra.mxu0 %vm1507_vm6, %v1975_v55 }
 0x3ff   :  { %v1311_v7 = vpop.permute.xlu1 %1310 }
 0x400   :  { %vm1490_vm7 = vcmp.gt.f32.partialorder %v1311_v7, %v3445_v25 }
 0x401   :  { %1763 = vmatpush.msk.msra.mxu3 %vm1490_vm7, %v1975_v55 }
 0x407   :  { %v1299_v3 = vpop.permute.xlu2 %1298 }
 0x408   :  { %vm1488_vm9 = vcmp.gt.f32.partialorder %v1299_v3, %v3445_v25 }
 0x40f   :  { %v1305_v23 = vpop.permute.xlu1 %1304 }
 0x410   :  { %vm1489_vm8 = vcmp.gt.f32.partialorder %v1305_v23, %v3445_v25 }
 0x411   :  { %1764 = vmatpush.msk.msra.mxu3 %vm1489_vm8, %v1975_v55 }
 0x413   :  { %1765 = vmatpush.msk.msra.mxu3 %vm1488_vm9, %v1975_v55 }
 0x415   :  { %1766 = vmatpush.msk.msra.mxu3 %vm1487_vm13, %v1975_v55 }
 0x416   :  { %1599 = vmatmul.f32.vlgmr.msra.gmra.mxu3 %v1975_v55 }
 0x417   :  { %v1402_v10 = vpop.permute.xlu2 %1401 }
 0x418   :  { %vm1505_vm10 = vcmp.gt.f32.partialorder %v1402_v10, %v3483_v62 }
 0x41f   :  { %v1408_v11 = vpop.permute.xlu1 %1407 }
 0x420   :  { %vm1506_vm14 = vcmp.gt.f32.partialorder %v1408_v11, %v3483_v62 }
 0x421   :  { %1779 = vmatpush.msk.msra.mxu0 %vm1506_vm14, %v1975_v55 }
 0x423   :  { %1780 = vmatpush.msk.msra.mxu0 %vm1505_vm10, %v1975_v55 }
 0x427   :  { %v1390_v28 = vpop.permute.xlu2 %1389 }
 0x428   :  { %vm1503_vm1 = vcmp.gt.f32.partialorder %v1390_v28, %v3483_v62 }
 0x42f   :  { %v1396_v56 = vpop.permute.xlu1 %1395 }
 0x430   :  { %vm1504_vm15 = vcmp.gt.f32.partialorder %v1396_v56, %v3483_v62 }
 0x431   :  { %1781 = vmatpush.msk.msra.mxu0 %vm1504_vm15, %v1975_v55 }
 0x433   :  { %1782 = vmatpush.msk.msra.mxu0 %vm1503_vm1, %v1975_v55 }
 0x434   :  { %1619 = vmatmul.f32.vlgmr.msra.gmra.mxu0 %v1975_v55 }
 0x438   :  { %v1626_v13 = vpop.permute.xlu1 %1625 }
 0x439   :  { %v1627_v25 = vrot.slane %v1626_v13, 1 }
 0x499   :  { %v1600_v18 = vpop.f32.mrf.mxu3 }
 0x49a   :  { %vm1630_vm11 = vcmp.lt.f32.partialorder %v1600_v18, %v1626_v13 }
 0x49b   :  { %v1783_v36 = vsel %vm1630_vm11, 1.0, %v3793_v44 }
 0x4b1   :  { %v1620_v14 = vpop.f32.mrf.mxu0 }
 0x4b2   :  { %vm1631_vm12 = vcmp.lt.f32.partialorder %v1620_v14, %v1627_v25 }
 0x4b3   :  { %v1784_v43 = vsel %vm1631_vm12, 1.0, %v3793_v44 }
 0x4b4   :  { %v1639_v17 = vrot.slane %v1784_v43, 7 }
 0x4b6   :  { %v1640_v20 = vsel %vm1210_vm0, %v1639_v17, %v1783_v36 }
 0x4b7   :  { %1642 = vst [vmem:[#allocation5] sm:$0x3] %v1640_v20 }
 0x4b8   :  { %1666 = dma.vmem_to_hbm [thread:$0]  %s1662_s28, 32, %s1664_s1, [#allocation6]  }
 0x4b9   :  { %1970 = dma.done.wait [#allocation4], 32  }
 0x4ba   :  { %1971 = vsyncadd [#allocation4], 4294967264 }
 0x4bb   :  { %1972 = dma.done.wait [#allocation6], 32  }
 0x4bc   :  { %1973 = vsyncadd [#allocation6], 4294967264 }
 0x4bd   :  { %1679 = vsyncpa [#allocation4], 1 }
 0x4be   :  { %1680 = vsyncpa [#allocation6], 1 }

</bundles_post_ra>
